<compile_context>
chip_gen: v5e
topology: v5e:2x2
jax: 0.10.0
libtpu: 0.0.40
codegen_flags: <defaults>
</compile_context>

<pallas_src>
import functools

import jax
import jax.numpy as jnp
from jax.experimental import pallas as pl
from jax.experimental.pallas import tpu as pltpu


# ----------------------------------------------------------------------------- fused kernel

def _fused_gated_pyg_kernel(h0_ref, a_ref, wp_ref, wih_ref, whh_ref, bi_ref, bhn_ref,
                            pool_ref, w1_ref, b1_ref, w2_ref, b2_ref,
                            out_ref, h_ref, *, d_pad, num_graphs):
    """grid=(L,): one GatedGraphConv(num_layers=1)+GRU+ReLU layer per step, h resident in VMEM.

    On the last step the readout (mean-pool -> fc1 -> ELU -> fc2 -> log_softmax(dim=0)) is
    fused in and written to out_ref.
    """
    layer = pl.program_id(0)

    @pl.when(layer == 0)
    def _init():
        h_ref[...] = h0_ref[...]

    h = h_ref[...]
    a = a_ref[...]

    # ---- message passing (sum aggregation over incoming edges): m = A @ (h @ W)
    hw = jnp.dot(h, wp_ref[0], preferred_element_type=jnp.float32)
    m = jnp.dot(a, hw, preferred_element_type=jnp.float32)

    # ---- GRUCell(m, h): two fused [N, 3D] gate matmuls instead of six [N, D] ones.
    gi = jnp.dot(m, wih_ref[0], preferred_element_type=jnp.float32) + bi_ref[0]
    gh = jnp.dot(h, whh_ref[0], preferred_element_type=jnp.float32)

    r = jax.nn.sigmoid(gi[:, 0 * d_pad:1 * d_pad] + gh[:, 0 * d_pad:1 * d_pad])
    z = jax.nn.sigmoid(gi[:, 1 * d_pad:2 * d_pad] + gh[:, 1 * d_pad:2 * d_pad])
    n = jnp.tanh(gi[:, 2 * d_pad:3 * d_pad] + r * (gh[:, 2 * d_pad:3 * d_pad] + bhn_ref[0]))

    h_new = (1.0 - z) * n + z * h
    h_relu = jnp.maximum(h_new, 0.0)               # F.relu fused in
    h_ref[...] = h_relu

    # ---- fused readout on the last layer
    @pl.when(layer == pl.num_programs(0) - 1)
    def _readout():
        hg = jnp.dot(pool_ref[...], h_relu, preferred_element_type=jnp.float32)      # [G, D]
        y = jnp.dot(hg, w1_ref[...], preferred_element_type=jnp.float32) + b1_ref[...]
        # ELU(alpha=1) without exp() of large positives
        y = jnp.where(y > 0.0, y, jnp.exp(jnp.minimum(y, 0.0)) - 1.0)
        y = jnp.dot(y, w2_ref[...], preferred_element_type=jnp.float32) + b2_ref[...]  # [G, C]

        # log_softmax over dim=0 (across graphs), excluding padded graph rows.
        g_pad, c_pad = y.shape
        row_ids = jax.lax.broadcasted_iota(jnp.int32, (g_pad, c_pad), 0)
        y_m = jnp.where(row_ids < num_graphs, y, jnp.float32(-1e30))
        mx = jnp.max(y_m, axis=0, keepdims=True)
        lse = jnp.log(jnp.sum(jnp.exp(y_m - mx), axis=0, keepdims=True)) + mx
        out_ref[...] = y - lse


# ----------------------------------------------------------------------------- wrapper

def gated_pyg_forward(h0, adj, pool, wp, wih, whh, bi, bhn, w1, b1, w2, b2,
                      num_graphs, n_classes, d_pad):
    """Eval-mode forward of Gated_PYG as one fused pallas_call.

    h0:   [N, in_feats]          adj: [N, N]             pool: [G_pad, N]
    wp:   [L, d_pad, d_pad]      wih/whh: [L, d_pad, 3*d_pad]
    bi:   [L, 1, 3*d_pad]        bhn: [L, 1, d_pad]
    w1:   [d_pad, d_pad] b1:[1,d_pad]   w2:[d_pad, c_pad] b2:[1,c_pad]
    """
    num_layers = wp.shape[0]
    n = h0.shape[0]
    g_pad = pool.shape[0]
    c_pad = w2.shape[1]

    h0p = jnp.pad(h0, ((0, 0), (0, d_pad - h0.shape[1])))   # pad features once, up front

    kernel = functools.partial(_fused_gated_pyg_kernel, d_pad=d_pad, num_graphs=num_graphs)

    out = pl.pallas_call(
        kernel,
        out_shape=jax.ShapeDtypeStruct((g_pad, c_pad), jnp.float32),
        grid_spec=pltpu.PrefetchScalarGridSpec(
            num_scalar_prefetch=0,
            grid=(num_layers,),
            in_specs=[
                pl.BlockSpec((n, d_pad), lambda l: (0, 0)),               # h0 (used at l==0)
                pl.BlockSpec((n, n), lambda l: (0, 0)),                   # adjacency
                pl.BlockSpec((1, d_pad, d_pad), lambda l: (l, 0, 0)),     # W_prop (per layer)
                pl.BlockSpec((1, d_pad, 3 * d_pad), lambda l: (l, 0, 0)), # W_ih   (per layer)
                pl.BlockSpec((1, d_pad, 3 * d_pad), lambda l: (l, 0, 0)), # W_hh   (per layer)
                pl.BlockSpec((1, 1, 3 * d_pad), lambda l: (l, 0, 0)),     # fused b_r|b_z|b_in
                pl.BlockSpec((1, 1, d_pad), lambda l: (l, 0, 0)),         # b_hn
                pl.BlockSpec((g_pad, n), lambda l: (0, 0)),               # mean-pool matrix
                pl.BlockSpec((d_pad, d_pad), lambda l: (0, 0)),           # fc1 W
                pl.BlockSpec((1, d_pad), lambda l: (0, 0)),               # fc1 b
                pl.BlockSpec((d_pad, c_pad), lambda l: (0, 0)),           # fc2 W
                pl.BlockSpec((1, c_pad), lambda l: (0, 0)),               # fc2 b
            ],
            out_specs=pl.BlockSpec((g_pad, c_pad), lambda l: (0, 0)),     # lane-dense logits
            scratch_shapes=[pltpu.VMEM((n, d_pad), jnp.float32)],         # resident h state
        ),
        compiler_params=pltpu.CompilerParams(dimension_semantics=("arbitrary",)),
    )(h0p, adj, wp, wih, whh, bi, bhn, pool, w1, b1, w2, b2)

    return out[:num_graphs, :n_classes]


# ----------------------------------------------------------------------------- param init

def init_gated_conv_params(key, d, d_pad):
    """GatedGraphConv(out_channels=d, num_layers=1) params, packed & zero-padded to d_pad.

    Returns (w_prop[d_pad,d_pad], w_ih[d_pad,3*d_pad], w_hh[d_pad,3*d_pad],
             b_i[1,3*d_pad] = (b_ir+b_hr | b_iz+b_hz | b_in), b_hn[1,d_pad]).
    Gate chunks are placed at d_pad-aligned offsets so the kernel can slice at 128 boundaries.
    """
    ks = jax.random.split(key, 13)
    s = 1.0 / jnp.sqrt(d)
    u = lambda k, shape: jax.random.uniform(k, shape, jnp.float32, -s, s)

    w = u(ks[0], (d, d))                                               # propagation weight
    wir, wiz, win = u(ks[1], (d, d)), u(ks[2], (d, d)), u(ks[3], (d, d))
    whr, whz, whn = u(ks[4], (d, d)), u(ks[5], (d, d)), u(ks[6], (d, d))
    bir, biz, bin_ = u(ks[7], (1, d)), u(ks[8], (1, d)), u(ks[9], (1, d))
    bhr, bhz, bhn = u(ks[10], (1, d)), u(ks[11], (1, d)), u(ks[12], (1, d))

    pad_mat = lambda m: jnp.pad(m, ((0, d_pad - m.shape[0]), (0, d_pad - m.shape[1])))
    pad_row = lambda v: jnp.pad(v, ((0, 0), (0, d_pad - v.shape[1])))

    w_prop = pad_mat(w)
    w_ih = jnp.concatenate([pad_mat(wir), pad_mat(wiz), pad_mat(win)], axis=1)
    w_hh = jnp.concatenate([pad_mat(whr), pad_mat(whz), pad_mat(whn)], axis=1)
    b_i = jnp.concatenate([pad_row(bir + bhr), pad_row(biz + bhz), pad_row(bin_)], axis=1)
    b_hn = pad_row(bhn)
    return w_prop, w_ih, w_hh, b_i, b_hn


def init_linear_params(key, d_in, d_out, d_in_pad, d_out_pad):
    k1, k2 = jax.random.split(key)
    s = 1.0 / jnp.sqrt(d_in)
    w = jax.random.uniform(k1, (d_in, d_out), jnp.float32, -s, s)      # stored as x @ W
    b = jax.random.uniform(k2, (1, d_out), jnp.float32, -s, s)
    w = jnp.pad(w, ((0, d_in_pad - d_in), (0, d_out_pad - d_out)))
    b = jnp.pad(b, ((0, 0), (0, d_out_pad - d_out)))
    return w, b


# ----------------------------------------------------------------------------- main

if __name__ == "__main__":
    in_feats, n_hidden, n_classes = 8, 32, 4
    num_nodes, num_graphs, num_edges = 16, 2, 40
    D_PAD = 128      # lane-aligned feature width
    C_PAD = 128      # lane-aligned class width
    G_PAD = 8        # sublane-aligned number of graphs

    root = jax.random.PRNGKey(0)
    k_h, k_e, k_p = jax.random.split(root, 3)

    # node features, random graph, batch assignment
    h0 = jax.random.normal(k_h, (num_nodes, in_feats), jnp.float32)
    src = jax.random.randint(jax.random.fold_in(k_e, 0), (num_edges,), 0, num_nodes)
    dst = jax.random.randint(jax.random.fold_in(k_e, 1), (num_edges,), 0, num_nodes)
    batch = jnp.concatenate([jnp.zeros(num_nodes // 2, jnp.int32),
                             jnp.ones(num_nodes - num_nodes // 2, jnp.int32)])

    # dense adjacency A[dst, src] (sum aggregation) and mean-pool matrix P[g, n]
    adj = jnp.zeros((num_nodes, num_nodes), jnp.float32).at[dst, src].add(1.0)
    onehot = (batch[None, :] == jnp.arange(num_graphs)[:, None]).astype(jnp.float32)
    pool = onehot / jnp.sum(onehot, axis=1, keepdims=True)                 # [G, N]
    pool = jnp.pad(pool, ((0, G_PAD - num_graphs), (0, 0)))                # [G_PAD, N]

    # 4 GatedGraphConv layers with out_channels = [in_feats, n_hidden, n_hidden, n_hidden]
    conv_dims = [in_feats, n_hidden, n_hidden, n_hidden]
    pkeys = jax.random.split(k_p, 6)
    layer_params = [init_gated_conv_params(pkeys[i], d, D_PAD)
                    for i, d in enumerate(conv_dims)]
    wp = jnp.stack([p[0] for p in layer_params])     # [L, D_PAD, D_PAD]
    wih = jnp.stack([p[1] for p in layer_params])    # [L, D_PAD, 3*D_PAD]
    whh = jnp.stack([p[2] for p in layer_params])    # [L, D_PAD, 3*D_PAD]
    bi = jnp.stack([p[3] for p in layer_params])     # [L, 1, 3*D_PAD]
    bhn = jnp.stack([p[4] for p in layer_params])    # [L, 1, D_PAD]

    w1, b1 = init_linear_params(pkeys[4], n_hidden, n_hidden, D_PAD, D_PAD)
    w2, b2 = init_linear_params(pkeys[5], n_hidden, n_classes, D_PAD, C_PAD)

    out = gated_pyg_forward(h0, adj, pool, wp, wih, whh, bi, bhn,
                            w1, b1, w2, b2, num_graphs, n_classes, D_PAD)
    out = jax.block_until_ready(out)

    assert out.shape == (num_graphs, n_classes)
    assert bool(jnp.all(jnp.isfinite(out)))
    # log_softmax over dim=0: each column's exp sums to 1 over the real graphs
    assert bool(jnp.allclose(jnp.sum(jnp.exp(out), axis=0), 1.0, atol=1e-4))

    print("KERNEL_OK")
</pallas_src>

<mosaic_0001>
module attributes {stable_mosaic.version = 11 : i64} {
  func.func @_fused_gated_pyg_kernel(%arg0: i32, %arg1: memref<16x128xf32, #tpu.memory_space<vmem>>, %arg2: memref<16x16xf32, #tpu.memory_space<vmem>>, %arg3: memref<1x128x128xf32, #tpu.memory_space<vmem>>, %arg4: memref<1x128x384xf32, #tpu.memory_space<vmem>>, %arg5: memref<1x128x384xf32, #tpu.memory_space<vmem>>, %arg6: memref<1x1x384xf32, #tpu.memory_space<vmem>>, %arg7: memref<1x1x128xf32, #tpu.memory_space<vmem>>, %arg8: memref<8x16xf32, #tpu.memory_space<vmem>>, %arg9: memref<128x128xf32, #tpu.memory_space<vmem>>, %arg10: memref<1x128xf32, #tpu.memory_space<vmem>>, %arg11: memref<128x128xf32, #tpu.memory_space<vmem>>, %arg12: memref<1x128xf32, #tpu.memory_space<vmem>>, %arg13: memref<8x128xf32, #tpu.memory_space<vmem>>, %arg14: memref<16x128xf32, #tpu.memory_space<vmem>>) attributes {dimension_semantics = [#tpu.dimension_semantics<arbitrary>], iteration_bounds = array<i64: 4>, scalar_prefetch = 0 : i64, scratch_operands = 1 : i64, tpu.core_type = #tpu.core_type<tc>, window_params = [{pipeline_mode = #tpu.pipeline_mode<synchronous>, transform_indices = @transform_0, window_bounds = array<i64: 16, 128>}, {pipeline_mode = #tpu.pipeline_mode<synchronous>, transform_indices = @transform_1, window_bounds = array<i64: 16, 16>}, {transform_indices = @transform_2, window_bounds = array<i64: 1, 128, 128>}, {transform_indices = @transform_3, window_bounds = array<i64: 1, 128, 384>}, {transform_indices = @transform_4, window_bounds = array<i64: 1, 128, 384>}, {transform_indices = @transform_5, window_bounds = array<i64: 1, 1, 384>}, {transform_indices = @transform_6, window_bounds = array<i64: 1, 1, 128>}, {pipeline_mode = #tpu.pipeline_mode<synchronous>, transform_indices = @transform_7, window_bounds = array<i64: 8, 16>}, {pipeline_mode = #tpu.pipeline_mode<synchronous>, transform_indices = @transform_8, window_bounds = array<i64: 128, 128>}, {pipeline_mode = #tpu.pipeline_mode<synchronous>, transform_indices = @transform_9, window_bounds = array<i64: 1, 128>}, {pipeline_mode = #tpu.pipeline_mode<synchronous>, transform_indices = @transform_10, window_bounds = array<i64: 128, 128>}, {pipeline_mode = #tpu.pipeline_mode<synchronous>, transform_indices = @transform_11, window_bounds = array<i64: 1, 128>}, {pipeline_mode = #tpu.pipeline_mode<synchronous>, transform_indices = @transform_12, window_bounds = array<i64: 8, 128>}]} {
    %c0_i32 = arith.constant 0 : i32
    %0 = arith.cmpi eq, %arg0, %c0_i32 : i32
    %1 = arith.extui %0 : i1 to i32
    %c0_i32_0 = arith.constant 0 : i32
    %2 = arith.cmpi ne, %1, %c0_i32_0 : i32
    scf.if %2 {
      %c0_29 = arith.constant 0 : index
      %c0_30 = arith.constant 0 : index
      %55 = vector.load %arg1[%c0_29, %c0_30] : memref<16x128xf32, #tpu.memory_space<vmem>>, vector<16x128xf32>
      %c0_31 = arith.constant 0 : index
      %c0_32 = arith.constant 0 : index
      %56 = vector.load %arg14[%c0_31, %c0_32] : memref<16x128xf32, #tpu.memory_space<vmem>>, vector<16x128xf32>
      tpu.vector_store %arg14[%c0_31, %c0_32], %55 {strides = array<i32>} : memref<16x128xf32, #tpu.memory_space<vmem>>, vector<16x128xf32>,
    } else {
    }
    %c0 = arith.constant 0 : index
    %c0_1 = arith.constant 0 : index
    %3 = vector.load %arg14[%c0, %c0_1] : memref<16x128xf32, #tpu.memory_space<vmem>>, vector<16x128xf32>
    %c0_2 = arith.constant 0 : index
    %c0_3 = arith.constant 0 : index
    %4 = vector.load %arg2[%c0_2, %c0_3] : memref<16x16xf32, #tpu.memory_space<vmem>>, vector<16x16xf32>
    %c0_4 = arith.constant 0 : index
    %c0_5 = arith.constant 0 : index
    %c0_6 = arith.constant 0 : index
    %5 = vector.load %arg3[%c0_4, %c0_5, %c0_6] : memref<1x128x128xf32, #tpu.memory_space<vmem>>, vector<1x128x128xf32>
    %6 = vector.shape_cast %5 : vector<1x128x128xf32> to vector<128x128xf32>
    %cst = arith.constant dense<0.000000e+00> : vector<16x128xf32>
    %7 = tpu.matmul %3, %6, %cst {dimension_numbers = #tpu.dot_dimension_numbers<[1], [0], [0], [1], [0, 0, 1, 1], [], []>} : vector<16x128xf32>, vector<128x128xf32>, vector<16x128xf32> -> vector<16x128xf32>
    %cst_7 = arith.constant dense<0.000000e+00> : vector<16x128xf32>
    %8 = tpu.matmul %4, %7, %cst_7 {dimension_numbers = #tpu.dot_dimension_numbers<[1], [0], [0], [1], [0, 0, 1, 1], [], []>} : vector<16x16xf32>, vector<16x128xf32>, vector<16x128xf32> -> vector<16x128xf32>
    %c0_8 = arith.constant 0 : index
    %c0_9 = arith.constant 0 : index
    %c0_10 = arith.constant 0 : index
    %9 = vector.load %arg4[%c0_8, %c0_9, %c0_10] : memref<1x128x384xf32, #tpu.memory_space<vmem>>, vector<1x128x384xf32>
    %10 = vector.shape_cast %9 : vector<1x128x384xf32> to vector<128x384xf32>
    %cst_11 = arith.constant dense<0.000000e+00> : vector<16x384xf32>
    %11 = tpu.matmul %8, %10, %cst_11 {dimension_numbers = #tpu.dot_dimension_numbers<[1], [0], [0], [1], [0, 0, 1, 1], [], []>} : vector<16x128xf32>, vector<128x384xf32>, vector<16x384xf32> -> vector<16x384xf32>
    %c0_12 = arith.constant 0 : index
    %c0_13 = arith.constant 0 : index
    %c0_14 = arith.constant 0 : index
    %12 = vector.load %arg6[%c0_12, %c0_13, %c0_14] : memref<1x1x384xf32, #tpu.memory_space<vmem>>, vector<1x1x384xf32>
    %13 = vector.shape_cast %12 : vector<1x1x384xf32> to vector<1x384xf32>
    %14 = vector.broadcast %13 : vector<1x384xf32> to vector<16x384xf32>
    %15 = arith.addf %11, %14 : vector<16x384xf32>
    %c0_15 = arith.constant 0 : index
    %c0_16 = arith.constant 0 : index
    %c0_17 = arith.constant 0 : index
    %16 = vector.load %arg5[%c0_15, %c0_16, %c0_17] : memref<1x128x384xf32, #tpu.memory_space<vmem>>, vector<1x128x384xf32>
    %17 = vector.shape_cast %16 : vector<1x128x384xf32> to vector<128x384xf32>
    %cst_18 = arith.constant dense<0.000000e+00> : vector<16x384xf32>
    %18 = tpu.matmul %3, %17, %cst_18 {dimension_numbers = #tpu.dot_dimension_numbers<[1], [0], [0], [1], [0, 0, 1, 1], [], []>} : vector<16x128xf32>, vector<128x384xf32>, vector<16x384xf32> -> vector<16x384xf32>
    %19 = vector.extract_strided_slice %15 {offsets = [0, 0], sizes = [16, 128], strides = [1, 1]} : vector<16x384xf32> to vector<16x128xf32>
    %20 = vector.extract_strided_slice %18 {offsets = [0, 0], sizes = [16, 128], strides = [1, 1]} : vector<16x384xf32> to vector<16x128xf32>
    %21 = arith.addf %19, %20 : vector<16x128xf32>
    %22 = arith.negf %21 : vector<16x128xf32>
    %23 = math.exp %22 : vector<16x128xf32>
    %cst_19 = arith.constant 1.000000e+00 : f32
    %24 = vector.broadcast %cst_19 : f32 to vector<16x128xf32>
    %25 = arith.addf %24, %23 : vector<16x128xf32>
    %26 = arith.divf %24, %25 : vector<16x128xf32>
    %27 = vector.extract_strided_slice %15 {offsets = [0, 128], sizes = [16, 128], strides = [1, 1]} : vector<16x384xf32> to vector<16x128xf32>
    %28 = vector.extract_strided_slice %18 {offsets = [0, 128], sizes = [16, 128], strides = [1, 1]} : vector<16x384xf32> to vector<16x128xf32>
    %29 = arith.addf %27, %28 : vector<16x128xf32>
    %30 = arith.negf %29 : vector<16x128xf32>
    %31 = math.exp %30 : vector<16x128xf32>
    %cst_20 = arith.constant 1.000000e+00 : f32
    %32 = vector.broadcast %cst_20 : f32 to vector<16x128xf32>
    %33 = arith.addf %32, %31 : vector<16x128xf32>
    %34 = arith.divf %32, %33 : vector<16x128xf32>
    %35 = vector.extract_strided_slice %15 {offsets = [0, 256], sizes = [16, 128], strides = [1, 1]} : vector<16x384xf32> to vector<16x128xf32>
    %36 = vector.extract_strided_slice %18 {offsets = [0, 256], sizes = [16, 128], strides = [1, 1]} : vector<16x384xf32> to vector<16x128xf32>
    %c0_21 = arith.constant 0 : index
    %c0_22 = arith.constant 0 : index
    %c0_23 = arith.constant 0 : index
    %37 = vector.load %arg7[%c0_21, %c0_22, %c0_23] : memref<1x1x128xf32, #tpu.memory_space<vmem>>, vector<1x1x128xf32>
    %38 = vector.shape_cast %37 : vector<1x1x128xf32> to vector<1x128xf32>
    %39 = vector.broadcast %38 : vector<1x128xf32> to vector<16x128xf32>
    %40 = arith.addf %36, %39 : vector<16x128xf32>
    %41 = arith.mulf %26, %40 : vector<16x128xf32>
    %42 = arith.addf %35, %41 : vector<16x128xf32>
    %43 = math.tanh %42 : vector<16x128xf32>
    %cst_24 = arith.constant 1.000000e+00 : f32
    %44 = vector.broadcast %cst_24 : f32 to vector<16x128xf32>
    %45 = arith.subf %44, %34 : vector<16x128xf32>
    %46 = arith.mulf %45, %43 : vector<16x128xf32>
    %47 = arith.mulf %34, %3 : vector<16x128xf32>
    %48 = arith.addf %46, %47 : vector<16x128xf32>
    %cst_25 = arith.constant 0.000000e+00 : f32
    %49 = vector.broadcast %cst_25 : f32 to vector<16x128xf32>
    %50 = arith.maximumf %48, %49 : vector<16x128xf32>
    %c0_26 = arith.constant 0 : index
    %c0_27 = arith.constant 0 : index
    %51 = vector.load %arg14[%c0_26, %c0_27] : memref<16x128xf32, #tpu.memory_space<vmem>>, vector<16x128xf32>
    tpu.vector_store %arg14[%c0_26, %c0_27], %50 {strides = array<i32>} : memref<16x128xf32, #tpu.memory_space<vmem>>, vector<16x128xf32>,
    %c3_i32 = arith.constant 3 : i32
    %52 = arith.cmpi eq, %arg0, %c3_i32 : i32
    %53 = arith.extui %52 : i1 to i32
    %c0_i32_28 = arith.constant 0 : i32
    %54 = arith.cmpi ne, %53, %c0_i32_28 : i32
    scf.if %54 {
      %c0_29 = arith.constant 0 : index
      %c0_30 = arith.constant 0 : index
      %55 = vector.load %arg8[%c0_29, %c0_30] : memref<8x16xf32, #tpu.memory_space<vmem>>, vector<8x16xf32>
      %cst_31 = arith.constant dense<0.000000e+00> : vector<8x128xf32>
      %56 = tpu.matmul %55, %50, %cst_31 {dimension_numbers = #tpu.dot_dimension_numbers<[1], [0], [0], [1], [0, 0, 1, 1], [], []>} : vector<8x16xf32>, vector<16x128xf32>, vector<8x128xf32> -> vector<8x128xf32>
      %c0_32 = arith.constant 0 : index
      %c0_33 = arith.constant 0 : index
      %57 = vector.load %arg9[%c0_32, %c0_33] : memref<128x128xf32, #tpu.memory_space<vmem>>, vector<128x128xf32>
      %cst_34 = arith.constant dense<0.000000e+00> : vector<8x128xf32>
      %58 = tpu.matmul %56, %57, %cst_34 {dimension_numbers = #tpu.dot_dimension_numbers<[1], [0], [0], [1], [0, 0, 1, 1], [], []>} : vector<8x128xf32>, vector<128x128xf32>, vector<8x128xf32> -> vector<8x128xf32>
      %c0_35 = arith.constant 0 : index
      %c0_36 = arith.constant 0 : index
      %59 = vector.load %arg10[%c0_35, %c0_36] : memref<1x128xf32, #tpu.memory_space<vmem>>, vector<1x128xf32>
      %60 = vector.broadcast %59 : vector<1x128xf32> to vector<8x128xf32>
      %61 = arith.addf %58, %60 : vector<8x128xf32>
      %cst_37 = arith.constant 0.000000e+00 : f32
      %62 = vector.broadcast %cst_37 : f32 to vector<8x128xf32>
      %63 = arith.cmpf ogt, %61, %62 : vector<8x128xf32>
      %cst_38 = arith.constant 0.000000e+00 : f32
      %64 = vector.broadcast %cst_38 : f32 to vector<8x128xf32>
      %65 = arith.minimumf %61, %64 : vector<8x128xf32>
      %66 = math.exp %65 : vector<8x128xf32>
      %cst_39 = arith.constant 1.000000e+00 : f32
      %67 = vector.broadcast %cst_39 : f32 to vector<8x128xf32>
      %68 = arith.subf %66, %67 : vector<8x128xf32>
      %69 = arith.select %63, %61, %68 : vector<8x128xi1>, vector<8x128xf32>
      %c0_40 = arith.constant 0 : index
      %c0_41 = arith.constant 0 : index
      %70 = vector.load %arg11[%c0_40, %c0_41] : memref<128x128xf32, #tpu.memory_space<vmem>>, vector<128x128xf32>
      %cst_42 = arith.constant dense<0.000000e+00> : vector<8x128xf32>
      %71 = tpu.matmul %69, %70, %cst_42 {dimension_numbers = #tpu.dot_dimension_numbers<[1], [0], [0], [1], [0, 0, 1, 1], [], []>} : vector<8x128xf32>, vector<128x128xf32>, vector<8x128xf32> -> vector<8x128xf32>
      %c0_43 = arith.constant 0 : index
      %c0_44 = arith.constant 0 : index
      %72 = vector.load %arg12[%c0_43, %c0_44] : memref<1x128xf32, #tpu.memory_space<vmem>>, vector<1x128xf32>
      %73 = vector.broadcast %72 : vector<1x128xf32> to vector<8x128xf32>
      %74 = arith.addf %71, %73 : vector<8x128xf32>
      %75 = tpu.iota {dimensions = array<i32: 0>} : vector<8x128xi32>
      %c2_i32 = arith.constant 2 : i32
      %76 = vector.broadcast %c2_i32 : i32 to vector<8x128xi32>
      %77 = arith.cmpi slt, %75, %76 : vector<8x128xi32>
      %cst_45 = arith.constant -1.000000e+30 : f32
      %78 = vector.broadcast %cst_45 : f32 to vector<8x128xf32>
      %79 = arith.select %77, %74, %78 : vector<8x128xi1>, vector<8x128xf32>
      %cst_46 = arith.constant dense<0xFF800000> : vector<128xf32>
      %80 = vector.multi_reduction <maximumf>, %79, %cst_46 [0] : vector<8x128xf32> to vector<128xf32>
      %81 = vector.shape_cast %80 : vector<128xf32> to vector<1x128xf32>
      %82 = vector.broadcast %81 : vector<1x128xf32> to vector<8x128xf32>
      %83 = arith.subf %79, %82 : vector<8x128xf32>
      %84 = math.exp %83 : vector<8x128xf32>
      %cst_47 = arith.constant dense<0.000000e+00> : vector<128xf32>
      %85 = vector.multi_reduction <add>, %84, %cst_47 [0] : vector<8x128xf32> to vector<128xf32>
      %86 = vector.shape_cast %85 : vector<128xf32> to vector<1x128xf32>
      %87 = math.log %86 : vector<1x128xf32>
      %88 = arith.addf %87, %81 : vector<1x128xf32>
      %89 = vector.broadcast %88 : vector<1x128xf32> to vector<8x128xf32>
      %90 = arith.subf %74, %89 : vector<8x128xf32>
      %c0_48 = arith.constant 0 : index
      %c0_49 = arith.constant 0 : index
      %91 = vector.load %arg13[%c0_48, %c0_49] : memref<8x128xf32, #tpu.memory_space<vmem>>, vector<8x128xf32>
      tpu.vector_store %arg13[%c0_48, %c0_49], %90 {strides = array<i32>} : memref<8x128xf32, #tpu.memory_space<vmem>>, vector<8x128xf32>,
    } else {
    }
    return
  }
  func.func @transform_0(%arg0: i32) -> (i32, i32) {
    %c0_i32 = arith.constant 0 : i32
    %c0_i32_0 = arith.constant 0 : i32
    %c0_i32_1 = arith.constant 0 : i32
    return %c0_i32, %c0_i32_0 : i32, i32
  }
  func.func @transform_1(%arg0: i32) -> (i32, i32) {
    %c0_i32 = arith.constant 0 : i32
    %c0_i32_0 = arith.constant 0 : i32
    %c0_i32_1 = arith.constant 0 : i32
    return %c0_i32, %c0_i32_0 : i32, i32
  }
  func.func @transform_2(%arg0: i32) -> (i32, i32, i32) {
    %c0_i32 = arith.constant 0 : i32
    %c0_i32_0 = arith.constant 0 : i32
    %c0_i32_1 = arith.constant 0 : i32
    return %arg0, %c0_i32, %c0_i32_0 : i32, i32, i32
  }
  func.func @transform_3(%arg0: i32) -> (i32, i32, i32) {
    %c0_i32 = arith.constant 0 : i32
    %c0_i32_0 = arith.constant 0 : i32
    %c0_i32_1 = arith.constant 0 : i32
    return %arg0, %c0_i32, %c0_i32_0 : i32, i32, i32
  }
  func.func @transform_4(%arg0: i32) -> (i32, i32, i32) {
    %c0_i32 = arith.constant 0 : i32
    %c0_i32_0 = arith.constant 0 : i32
    %c0_i32_1 = arith.constant 0 : i32
    return %arg0, %c0_i32, %c0_i32_0 : i32, i32, i32
  }
  func.func @transform_5(%arg0: i32) -> (i32, i32, i32) {
    %c0_i32 = arith.constant 0 : i32
    %c0_i32_0 = arith.constant 0 : i32
    %c0_i32_1 = arith.constant 0 : i32
    return %arg0, %c0_i32, %c0_i32_0 : i32, i32, i32
  }
  func.func @transform_6(%arg0: i32) -> (i32, i32, i32) {
    %c0_i32 = arith.constant 0 : i32
    %c0_i32_0 = arith.constant 0 : i32
    %c0_i32_1 = arith.constant 0 : i32
    return %arg0, %c0_i32, %c0_i32_0 : i32, i32, i32
  }
  func.func @transform_7(%arg0: i32) -> (i32, i32) {
    %c0_i32 = arith.constant 0 : i32
    %c0_i32_0 = arith.constant 0 : i32
    %c0_i32_1 = arith.constant 0 : i32
    return %c0_i32, %c0_i32_0 : i32, i32
  }
  func.func @transform_8(%arg0: i32) -> (i32, i32) {
    %c0_i32 = arith.constant 0 : i32
    %c0_i32_0 = arith.constant 0 : i32
    %c0_i32_1 = arith.constant 0 : i32
    return %c0_i32, %c0_i32_0 : i32, i32
  }
  func.func @transform_9(%arg0: i32) -> (i32, i32) {
    %c0_i32 = arith.constant 0 : i32
    %c0_i32_0 = arith.constant 0 : i32
    %c0_i32_1 = arith.constant 0 : i32
    return %c0_i32, %c0_i32_0 : i32, i32
  }
  func.func @transform_10(%arg0: i32) -> (i32, i32) {
    %c0_i32 = arith.constant 0 : i32
    %c0_i32_0 = arith.constant 0 : i32
    %c0_i32_1 = arith.constant 0 : i32
    return %c0_i32, %c0_i32_0 : i32, i32
  }
  func.func @transform_11(%arg0: i32) -> (i32, i32) {
    %c0_i32 = arith.constant 0 : i32
    %c0_i32_0 = arith.constant 0 : i32
    %c0_i32_1 = arith.constant 0 : i32
    return %c0_i32, %c0_i32_0 : i32, i32
  }
  func.func @transform_12(%arg0: i32) -> (i32, i32) {
    %c0_i32 = arith.constant 0 : i32
    %c0_i32_0 = arith.constant 0 : i32
    %c0_i32_1 = arith.constant 0 : i32
    return %c0_i32, %c0_i32_0 : i32, i32
  }
}

</mosaic_0001>

<bundles_post_ra>
// kernel: tpu_custom_call.1
= control target key start
LH: loop header
LB: loop body
LE: loop exit
PB: predicated region body
PF: predicated region fallthrough
CT: control target
= control target key end

     0   :  { %s2429_s0 = inlined_call_operand.hbm [shape: f32[16,128], index: 0, kind: input, shape index: {}]   ;;  %s2430_s1 = inlined_call_operand.hbm [shape: f32[16,16], index: 1, kind: input, shape index: {}]   ;;  %s2431_s2 = inlined_call_operand.hbm [shape: f32[4,128,128], index: 2, kind: input, shape index: {}]   ;;  %s2432_s3 = inlined_call_operand.hbm [shape: f32[4,128,384], index: 3, kind: input, shape index: {}]   ;;  %s2433_s4 = inlined_call_operand.hbm [shape: f32[4,128,384], index: 4, kind: input, shape index: {}]   ;;  %s2434_s5 = inlined_call_operand.hbm [shape: f32[4,1,384], index: 5, kind: input, shape index: {}]   ;;  %s2435_s6 = inlined_call_operand.vmem [shape: f32[4,1,128], index: 6, kind: input, shape index: {}]   ;;  %s2436_s7 = inlined_call_operand.hbm [shape: f32[8,16], index: 7, kind: input, shape index: {}]   ;;  %s2437_s8 = inlined_call_operand.hbm [shape: f32[128,128], index: 8, kind: input, shape index: {}]   ;;  %s2438_s9 = inlined_call_operand.vmem [shape: f32[1,128], index: 9, kind: input, shape index: {}]   ;;  %s2439_s10 = inlined_call_operand.hbm [shape: f32[128,128], index: 10, kind: input, shape index: {}]   ;;  %s2440_s11 = inlined_call_operand.vmem [shape: f32[1,128], index: 11, kind: input, shape index: {}]   ;;  %s2441_s12 = inlined_call_operand.hbm [shape: f32[8,128], index: 12, kind: output, shape index: {}]  }
   0x1   :  { %2451 = sst [smem:[#allocation26_spill]] %s2429_s0 }
   0x2   :  { %2452 = sst [smem:[#allocation27_spill]] %s2430_s1 }
   0x3   :  { %2453 = sst [smem:[#allocation28_spill]] %s2431_s2 }
   0x4   :  { %2454 = sst [smem:[#allocation29_spill]] %s2432_s3 }
   0x5   :  { %2455 = sst [smem:[#allocation30_spill]] %s2435_s6 }
   0x6   :  { %2456 = sst [smem:[#allocation31_spill]] %s2438_s9 }
   0x7   :  { %2457 = sst [smem:[#allocation32_spill]] %s2440_s11 }
   0x8   :  { %2458 = sst [smem:[#allocation33_spill]] %s2441_s12 }
   0x9   :  { %17 = vsyncpa [#allocation4], 0 }
   0xa   :  { %18 = vsyncpa [#allocation7], 0 }
   0xb   :  { %19 = vsyncpa [#allocation14], 0 }
   0xc   :  { %20 = vsyncpa [#allocation5], 0  ;;  %s2001_s21 = smov 0   ;;  %s2003_s22 = smov 0  }
   0xd   :  { %s2005_s23 = smov 0   ;;  %s2007_s24 = smov 0  }
   0xe LB: > { %2459 = sst [smem:[#allocation23_spill]] %s1920_s23  ;;  %s2020_s25 = sadd.s32 4294967295, %s1924_s24   ;;  %s1924_s24 = sphi %s2007_s24, %s2481_s24   ;;  %s1920_s23 = sphi %s2005_s23, %s2483_s23   ;;  %s1916_s22 = sphi %s2003_s22, %s2485_s22   ;;  %s1912_s21 = sphi %s2001_s21, %s2484_s21  }
   0xf   : > { %p88_p0 = scmp.ne.s32.totalorder %s1916_s22, %s1912_s21  ;;  %p89_p1 = scmp.eq.s32.totalorder %s2020_s25, 0 }
  0x10   : > { %p1369_p2 = scmp.ge.s32.totalorder %s1924_s24, 1  ;;  %p329_p3 = scmp.lt.s32.totalorder %s1924_s24, 5 }
  0x11   : > { %p1370_p4 = scmp.ne.s32.totalorder %s2020_s25, 0  ;;  %p2029_p5 = por %p89_p1, %p88_p0 }
  0x12   : > { %s2461_s0 = sld [smem:[#allocation26_spill]]  ;;  %p2036_p6 = pnand %p1369_p2, %p329_p3 }
  0x13   : > { %s1926_s13 = smov [#allocation3]   ;;  %s2049_s16 = sadd.s32 1, %s1924_s24  }
  0x14   : > { %p1459_p7 = pneg %p2036_p6  ;;  %s342_s14 = sshll.u32 %s1926_s13, 4  ;;  %s343_s14 = int_to_ptr.vmem [resolvable:$true] %s342_s14 }
  0x15   : > { %2464 = sst [smem:[#allocation24_spill]] %s2049_s16  ;;  %s2442_s17 = smov 128  }
  0x16   : > { %p2044_p8 = pnand %p1459_p7, %p89_p1  ;;  %s2444_s18 = smov 8  }
  0x17   : > { %s72_s19 = ssub.s32 %s1924_s24, %s2049_s16  ;;  %s75_s20 = sadd.s32 1, %s1920_s23 }
  0x18   : > { %s340_s29 = sshll.u32 %s2461_s0, 4  ;;  %p73_p9 = scmp.eq.s32.totalorder %s72_s19, 0  ;;  %s341_s29 = int_to_ptr.hbm [resolvable:$true] %s340_s29 }
  0x19   : > { %1462 = dma.hbm_to_vmem [thread:$0]  (!%p2044_p8), %s341_s29, 256, %s343_s14, [#allocation4], %s2442_s17, %s2442_s17, %s2444_s18  }
  0x1a   : > { %p82_p10 = scmp.ne.s32.totalorder %s1920_s23, %s1916_s22  ;;  %p83_p11 = scmp.eq.s32.totalorder %s1924_s24, 0 }
  0x1b   : > { %p1493_p12 = scmp.lt.s32.totalorder %s1924_s24, 4  ;;  %s416_s27 = sand.u32 1, %s1924_s24  }
  0x1c   : > { %s2064_s21 = scalar_select %p73_p9, %s1920_s23, %s75_s20  }
  0x1d   : > { %p84_p13 = por %p83_p11, %p82_p10  ;;  %s2068_s28 = sand.u32 1, %s1920_s23  }
  0x1e   : > { %2465 = sst [smem:[#allocation25_spill]] %s2064_s21  ;;  %s1376_s13 = sshll.u32 %s2068_s28, 7 }
  0x1f   : > { %s1402_s0 = sshll.u32 %s1924_s24, 7  ;;  %s2466_s2 = sld [smem:[#allocation28_spill]] }
  0x20   : > { %s420_s17 = scalar_lea.vmem [#allocation8], %s1376_s13  ;;  %p2077_p0 = pnand %p1493_p12, %p84_p13 }
  0x21   : > { %s428_s18 = sshll.u32 %s420_s17, 4  ;;  %s1420_s23 = smul.u32 384, %s1924_s24  ;;  %s429_s18 = int_to_ptr.vmem [resolvable:$true] %s428_s18 }
  0x22   : > { %s2083_s16 = scalar_lea.sflag [#allocation4], %s416_s27  ;;  %p1606_p3 = pneg %p2077_p0 }
  0x25   : > { %s425_s14 = scalar_lea.hbm %s2466_s2, %s1402_s0  ;;  %s1609_s13 = scalar_lea.hbm %s2466_s2, 512 }
  0x26   : > { %s426_s19 = sshll.u32 %s425_s14, 4  ;;  %s427_s19 = int_to_ptr.hbm [resolvable:$true] %s426_s19 }
  0x27   : > { %s1602_s11 = sshra.s32 %s427_s19, 4  ;;  %s1603_s11 = int_to_ptr.hbm [resolvable:$true] %s1602_s11 }
  0x28   : > { %s1604_s12 = scalar_lea.hbm %s1603_s11, 128  ;;  %p1610_p10 = scmp.lt.s32.totalorder %s1603_s11, %s2466_s2 }
  0x29   : > { %p1605_p2 = scmp.ne.s32.totalorder %s1603_s11, %s1604_s12  ;;  %p1611_p11 = scmp.lt.s32.totalorder %s1609_s13, %s1604_s12 }
  0x2b   : > { %p1607_p7 = pnand %p1606_p3, %p1605_p2  ;;  %p1612_p12 = por %p1611_p11, %p1610_p10 }
  0x2d   : > { %p1608_p9 = pneg %p1607_p7 }
  0x2f   : > { %p1613_p13 = pnand %p1612_p12, %p1608_p9 }
  0x31   : > { %1616 = shalt.err (!%p1613_p13)
}
  0x32   : > { %s2468_s27 = smov 8   ;;  %s2469_s21 = smov 128  }
  0x33   : > { %1478 = dma.hbm_to_vmem [thread:$0]  (!%p2077_p0), %s427_s19, 2048, %s429_s18, %s2083_s16, %s2469_s21, %s2469_s21, %s2468_s27  }
  0x34   : > { %s2470_s3 = sld [smem:[#allocation29_spill]]  ;;  %s2471_s11 = smul.u32 384, %s2068_s28 }
  0x36   : > { %s442_s12 = scalar_lea.vmem [#allocation9], %s2471_s11 }
  0x37   : > { %s450_s13 = sshll.u32 %s442_s12, 4  ;;  %s451_s13 = int_to_ptr.vmem [resolvable:$true] %s450_s13 }
  0x3a   : > { %s447_s29 = scalar_lea.hbm %s2470_s3, %s1420_s23  ;;  %s1639_s6 = scalar_lea.hbm %s2470_s3, 1536 }
  0x3b   : > { %s448_s14 = sshll.u32 %s447_s29, 4  ;;  %s449_s14 = int_to_ptr.hbm [resolvable:$true] %s448_s14 }
  0x3c   : > { %s1632_s2 = sshra.s32 %s449_s14, 4  ;;  %s1633_s2 = int_to_ptr.hbm [resolvable:$true] %s1632_s2 }
  0x3d   : > { %s1634_s9 = scalar_lea.hbm %s1633_s2, 384  ;;  %p1640_p10 = scmp.lt.s32.totalorder %s1633_s2, %s2470_s3 }
  0x3e   : > { %p1635_p2 = scmp.ne.s32.totalorder %s1633_s2, %s1634_s9  ;;  %p1641_p11 = scmp.lt.s32.totalorder %s1639_s6, %s1634_s9 }
  0x40   : > { %p1637_p7 = pnand %p1635_p2, %p1606_p3  ;;  %p1642_p12 = por %p1641_p11, %p1640_p10 }
  0x42   : > { %p1638_p9 = pneg %p1637_p7 }
  0x44   : > { %p1643_p13 = pnand %p1642_p12, %p1638_p9 }
  0x46   : > { %1646 = shalt.err (!%p1643_p13)
}
  0x47   : > { %s2449_s29 = smov 384   ;;  %s2450_s11 = smov 24  }
  0x48   : > { %1481 = dma.hbm_to_vmem [thread:$0]  (!%p2077_p0), %s449_s14, 6144, %s451_s13, %s2083_s16, %s2449_s29, %s2449_s29, %s2450_s11  }
  0x49   : > { %s2472_s1 = sld [smem:[#allocation27_spill]]  ;;  %s1931_s6 = smov [#allocation6]  }
  0x4a   : > { %s356_s9 = sshll.u32 %s1931_s6, 4  ;;  %s380_s17 = sshll.u32 %s2437_s8, 4  ;;  %s357_s9 = int_to_ptr.vmem [resolvable:$true] %s356_s9  ;;  %s381_s17 = int_to_ptr.hbm [resolvable:$true] %s380_s17 }
  0x4b   : > { %s1932_s13 = smov [#allocation13]   ;;  %s469_s6 = scalar_lea.hbm %s2433_s4, %s1420_s23 }
  0x4c   : > { %s382_s14 = sshll.u32 %s1932_s13, 4  ;;  %s470_s19 = sshll.u32 %s469_s6, 4  ;;  %s383_s14 = int_to_ptr.vmem [resolvable:$true] %s382_s14  ;;  %s471_s19 = int_to_ptr.hbm [resolvable:$true] %s470_s19 }
  0x4d   : > { %1471 = dma.hbm_to_vmem [thread:$0]  (!%p2044_p8), %s381_s17, 2048, %s383_s14, [#allocation14], %s2469_s21, %s2469_s21, %s2468_s27  }
  0x4e   : > { %s2473_s0 = smul.u32 384, %s2068_s28  ;;  %s1729_s12 = scalar_lea.hbm %s2433_s4, 1536 }
  0x4f   : > { %s354_s2 = sshll.u32 %s2472_s1, 4  ;;  %s355_s2 = int_to_ptr.hbm [resolvable:$true] %s354_s2 }
  0x50   : > { %1465 = dma.hbm_to_vmem [thread:$0]  (!%p2044_p8), %s355_s2, 256, %s357_s9, [#allocation7], %s2469_s21, %s2469_s21, %s2468_s27  }
  0x51   : > { %s464_s29 = scalar_lea.vmem [#allocation10], %s2473_s0  ;;  %s1722_s2 = sshra.s32 %s471_s19, 4  ;;  %s1723_s2 = int_to_ptr.hbm [resolvable:$true] %s1722_s2 }
  0x52   : > { %s472_s11 = sshll.u32 %s464_s29, 4  ;;  %s1724_s9 = scalar_lea.hbm %s1723_s2, 384  ;;  %s473_s11 = int_to_ptr.vmem [resolvable:$true] %s472_s11 }
  0x53   : > { %p1725_p2 = scmp.ne.s32.totalorder %s1723_s2, %s1724_s9  ;;  %p1730_p10 = scmp.lt.s32.totalorder %s1723_s2, %s2433_s4 }
  0x54   : > { %p1731_p11 = scmp.lt.s32.totalorder %s1729_s12, %s1724_s9 }
  0x55   : > { %p1727_p7 = pnand %p1725_p2, %p1606_p3 }
  0x56   : > { %p1732_p12 = por %p1731_p11, %p1730_p10 }
  0x57   : > { %p1728_p9 = pneg %p1727_p7 }
  0x59   : > { %p1733_p13 = pnand %p1732_p12, %p1728_p9 }
  0x5b   : > { %1736 = shalt.err (!%p1733_p13)
}
  0x5c   : > { %s2474_s29 = smov 24   ;;  %s2475_s14 = smov 384  }
  0x5d   : > { %1484 = dma.hbm_to_vmem [thread:$0]  (!%p2077_p0), %s471_s19, 6144, %s473_s11, %s2083_s16, %s2475_s14, %s2475_s14, %s2474_s29  }
  0x5e   : > { %s369_s23 = sshll.u32 %s2436_s7, 4  ;;  %s1933_s2 = smov [#allocation12]   ;;  %s370_s23 = int_to_ptr.hbm [resolvable:$true] %s369_s23 }
  0x5f   : > { %s371_s9 = sshll.u32 %s1933_s2, 4  ;;  %s397_s18 = sshll.u32 %s2439_s10, 4  ;;  %s372_s9 = int_to_ptr.vmem [resolvable:$true] %s371_s9  ;;  %s398_s18 = int_to_ptr.hbm [resolvable:$true] %s397_s18 }
  0x60   : > { %1468 = dma.hbm_to_vmem [thread:$0]  (!%p2044_p8), %s370_s23, 128, %s372_s9, [#allocation7]  }
  0x61   : > { %s1934_s17 = smov [#allocation15]   ;;  %s1423_s3 = smul.u32 3, %s2068_s28 }
  0x62   : > { %s399_s1 = sshll.u32 %s1934_s17, 4  ;;  %s1424_s11 = smul.u32 3, %s1924_s24  ;;  %s400_s1 = int_to_ptr.vmem [resolvable:$true] %s399_s1 }
  0x63   : > { %1474 = dma.hbm_to_vmem [thread:$0]  (!%p2044_p8), %s398_s18, 2048, %s400_s1, [#allocation14], %s2469_s21, %s2469_s21, %s2468_s27  }
  0x64   : > { %s490_s14 = scalar_lea.hbm %s2434_s5, %s1424_s11  ;;  %s486_s0 = scalar_lea.vmem [#allocation11], %s1423_s3 }
  0x65   : > { %s492_s6 = sshll.u32 %s490_s14, 4  ;;  %s494_s2 = sshll.u32 %s486_s0, 4  ;;  %s493_s6 = int_to_ptr.hbm [resolvable:$true] %s492_s6  ;;  %s495_s2 = int_to_ptr.vmem [resolvable:$true] %s494_s2 }
  0x66   : > { %s1812_s23 = sshra.s32 %s493_s6, 4  ;;  %s1819_s1 = scalar_lea.hbm %s2434_s5, 12  ;;  %s1813_s23 = int_to_ptr.hbm [resolvable:$true] %s1812_s23 }
  0x67   : > { %s1814_s9 = scalar_lea.hbm %s1813_s23, 3  ;;  %p1820_p8 = scmp.lt.s32.totalorder %s1813_s23, %s2434_s5 }
  0x68   : > { %p1815_p2 = scmp.ne.s32.totalorder %s1813_s23, %s1814_s9  ;;  %p1821_p10 = scmp.lt.s32.totalorder %s1819_s1, %s1814_s9 }
  0x6a   : > { %p1817_p7 = pnand %p1815_p2, %p1606_p3  ;;  %p1822_p11 = por %p1821_p10, %p1820_p8 }
  0x6c   : > { %p1818_p9 = pneg %p1817_p7 }
  0x6e   : > { %p1823_p12 = pnand %p1822_p11, %p1818_p9 }
  0x70   : > { %1826 = shalt.err (!%p1823_p12)
}
  0x71   : > { %1487 = dma.hbm_to_vmem [thread:$0]  (!%p2077_p0), %s493_s6, 48, %s495_s2, %s2083_s16  }
  0x72   : > { %509 = sbr.rel (%p2036_p6) target bundleno = 1100 (0x44c), region = 68 }
  0x77   : > { %1887 = dma.done.wait (%p89_p1), [#allocation4], 256  }
  0x78   : > { %1889 = vsyncadd (%p89_p1), [#allocation4], 4294967040 }
  0x79   : > { %1891 = dma.done.wait (%p89_p1), [#allocation7], 256  }
  0x7a   : > { %1893 = vsyncadd (%p89_p1), [#allocation7], 4294967040  ;;  %s521_s3 = sand.u32 1, %s2020_s25   ;;  %s523_s16 = sand.u32 1, %s1916_s22  }
  0x7b   : > { %s1384_s20 = sshll.u32 %s523_s16, 7  ;;  %s522_s30 = scalar_lea.sflag [#allocation4], %s521_s3 }
  0x7c   : > { %s2204_s27 = scalar_lea.vmem [#allocation8], %s1384_s20 }
  0x7d   : > { %1895 = dma.done.wait (%p2029_p5), %s522_s30, 14384  }
  0x7e   : > { %1897 = vsyncadd (%p2029_p5), %s522_s30, 4294952912  ;;  %s1425_s13 = smul.u32 384, %s523_s16 }
  0x7f   : > { %s1426_s12 = smul.u32 3, %s523_s16 }
  0x80   : > { %s2210_s18 = scalar_lea.vmem [#allocation9], %s1425_s13  ;;  %s2212_s17 = scalar_lea.vmem [#allocation10], %s1425_s13 }
  0x81   : > { %s2214_s11 = scalar_lea.vmem [#allocation11], %s1426_s12 }
  0x82   : > { %1899 = dma.done.wait (%p89_p1), [#allocation7], 128  }
  0x83   : > { %1901 = vsyncadd (%p89_p1), [#allocation7], 4294967168 }
  0x84   : > { %1903 = dma.done.wait (%p89_p1), [#allocation14], 4096  }
  0x85   : > { %1905 = vsyncadd (%p89_p1), [#allocation14], 4294963200  ;;  %p625_p5 = scmp.lt.s32.totalorder %s2020_s25, 3  ;;  %s2476_s14 = sld [smem:[#allocation30_spill]] }
  0x87   : > { %s2226_s26 = scalar_select %p625_p5, %s2020_s25, 3 }
  0x88   : > { %631 = sbr.rel (%p1370_p4) target bundleno = 144 (0x90), region = 108 }
  0x8b   : > { %s627_s6 = scalar_lea.vmem %s2476_s14, %s2226_s26 }
  0x8d   : > { %v632_v0 = vld [vmem:[#allocation3] sm:$0xff]  ;;  %v633_v1 = vld [vmem:[#allocation3 + $0x8] sm:$0xff] }
  0x8e   : > { %634 = vst [vmem:[#allocation2] sm:$0xff] %v632_v0 }
  0x8f   : > { %635 = vst [vmem:[#allocation2 + $0x8] sm:$0xff] %v633_v1 }
  0x90 PF: > { %v655_v2 = vld [vmem:[%s2204_s27 + $0x78] sm:$0xff]  ;;  %v654_v3 = vld [vmem:[%s2204_s27 + $0x70] sm:$0xff]  ;;  %v653_v4 = vld [vmem:[%s2204_s27 + $0x68] sm:$0xff]  ;;  %vm679_vm0 = vcmask 130048   ;;  %p1395_p1 = scmp.ne.s32.totalorder %s2020_s25, 3 }
  0x91   : > { %656 = vmatpush.msra.mxu0 %v655_v2  ;;  %v652_v5 = vld [vmem:[%s2204_s27 + $0x60] sm:$0xff]  ;;  %v651_v6 = vld [vmem:[%s2204_s27 + $0x58] sm:$0xff]  ;;  %v650_v7 = vld [vmem:[%s2204_s27 + $0x50] sm:$0xff]  ;;  %s2478_s15 = sld [smem:[#allocation31_spill]] (!%p1395_p1) }
  0x92   : > { %v649_v8 = vld [vmem:[%s2204_s27 + $0x48] sm:$0xff]  ;;  %v648_v9 = vld [vmem:[%s2204_s27 + $0x40] sm:$0xff]  ;;  %v647_v10 = vld [vmem:[%s2204_s27 + $0x38] sm:$0xff]  ;;  %s2479_s28 = sld [smem:[#allocation32_spill]] (!%p1395_p1) }
  0x93   : > { %657 = vmatpush.msra.mxu0 %v654_v3  ;;  %v646_v11 = vld [vmem:[%s2204_s27 + $0x30] sm:$0xff]  ;;  %v645_v12 = vld [vmem:[%s2204_s27 + $0x28] sm:$0xff]  ;;  %v644_v13 = vld [vmem:[%s2204_s27 + $0x20] sm:$0xff] }
  0x94   : > { %v643_v14 = vld [vmem:[%s2204_s27 + $0x18] sm:$0xff]  ;;  %v642_v15 = vld [vmem:[%s2204_s27 + $0x10] sm:$0xff]  ;;  %v641_v16 = vld [vmem:[%s2204_s27 + $0x8] sm:$0xff] }
  0x95   : > { %658 = vmatpush.msra.mxu0 %v653_v4  ;;  %v640_v17 = vld [vmem:[%s2204_s27] sm:$0xff]  ;;  %v2250_v18 = vld [vmem:[#allocation2] sm:$0xff]  ;;  %v754_v20 = vld [vmem:[%s2210_s18 + $0x168] sm:$0xff] }
  0x96   : > { %v2253_v19 = vld [vmem:[#allocation2 + $0x8] sm:$0xff]  ;;  %v751_v21 = vld [vmem:[%s2210_s18 + $0x150] sm:$0xff]  ;;  %765 = vmatpush.msra.mxu2 %v754_v20  ;;  %v745_v23 = vld [vmem:[%s2210_s18 + $0x120] sm:$0xff] }
  0x97   : > { %659 = vmatpush.msra.mxu0 %v652_v5  ;;  %v748_v22 = vld [vmem:[%s2210_s18 + $0x138] sm:$0xff]  ;;  %v755_v24 = vld [vmem:[%s2210_s18 + $0x170] sm:$0xff]  ;;  %v742_v25 = vld [vmem:[%s2210_s18 + $0x108] sm:$0xff] }
  0x98   : > { %766 = vmatpush.msra.mxu2 %v751_v21  ;;  %788 = vmatpush.msra.mxu3 %v755_v24  ;;  %v752_v26 = vld [vmem:[%s2210_s18 + $0x158] sm:$0xff]  ;;  %v739_v27 = vld [vmem:[%s2210_s18 + $0xf0] sm:$0xff]  ;;  %v749_v28 = vld [vmem:[%s2210_s18 + $0x140] sm:$0xff] }
  0x99   : > { %660 = vmatpush.msra.mxu0 %v651_v6  ;;  %v736_v29 = vld [vmem:[%s2210_s18 + $0xd8] sm:$0xff]  ;;  %v746_v30 = vld [vmem:[%s2210_s18 + $0x128] sm:$0xff]  ;;  %v733_v32 = vld [vmem:[%s2210_s18 + $0xc0] sm:$0xff] }
  0x9a   : > { %767 = vmatpush.msra.mxu2 %v748_v22  ;;  %789 = vmatpush.msra.mxu3 %v752_v26  ;;  %v743_v33 = vld [vmem:[%s2210_s18 + $0x110] sm:$0xff]  ;;  %v730_v34 = vld [vmem:[%s2210_s18 + $0xa8] sm:$0xff]  ;;  %v740_v36 = vld [vmem:[%s2210_s18 + $0xf8] sm:$0xff] }
  0x9b   : > { %661 = vmatpush.msra.mxu0 %v650_v7  ;;  %v2271_v35 = vld [vmem:[%s2212_s17 + $0x168] sm:$0xff]  ;;  %v727_v37 = vld [vmem:[%s2210_s18 + $0x90] sm:$0xff]  ;;  %v737_v39 = vld [vmem:[%s2210_s18 + $0xe0] sm:$0xff] }
  0x9c   : > { %768 = vmatpush.msra.mxu2 %v745_v23  ;;  %790 = vmatpush.msra.mxu3 %v749_v28  ;;  %v2277_v38 = vld [vmem:[%s2212_s17 + $0x150] sm:$0xff]  ;;  %v724_v40 = vld [vmem:[%s2210_s18 + $0x78] sm:$0xff]  ;;  %v734_v42 = vld [vmem:[%s2210_s18 + $0xc8] sm:$0xff] }
  0x9d   : > { %662 = vmatpush.msra.mxu0 %v649_v8  ;;  %v2283_v41 = vld [vmem:[%s2212_s17 + $0x138] sm:$0xff]  ;;  %v721_v44 = vld [vmem:[%s2210_s18 + $0x60] sm:$0xff]  ;;  %v638_v45 = vld [vmem:[#allocation6] sm:$0xff] }
  0x9e   : > { %769 = vmatpush.msra.mxu2 %v742_v25  ;;  %791 = vmatpush.msra.mxu3 %v746_v30  ;;  %v2289_v46 = vld [vmem:[%s2212_s17 + $0x120] sm:$0xff]  ;;  %v731_v47 = vld [vmem:[%s2210_s18 + $0xb0] sm:$0xff]  ;;  %v756_v48 = vld [vmem:[%s2210_s18 + $0x178] sm:$0xff] }
  0x9f   : > { %663 = vmatpush.msra.mxu0 %v648_v9  ;;  %v718_v49 = vld [vmem:[%s2210_s18 + $0x48] sm:$0xff]  ;;  %v753_v50 = vld [vmem:[%s2210_s18 + $0x160] sm:$0xff]  ;;  %v715_v51 = vld [vmem:[%s2210_s18 + $0x30] sm:$0xff] }
  0xa0   : > { %770 = vmatpush.msra.mxu2 %v739_v27  ;;  %792 = vmatpush.msra.mxu3 %v743_v33  ;;  %v2299_v52 = vld [vmem:[%s2212_s17 + $0x108] sm:$0xff]  ;;  %v728_v53 = vld [vmem:[%s2210_s18 + $0x98] sm:$0xff]  ;;  %v2306_v56 = vld [vmem:[%s2212_s17 + $0xf0] sm:$0xff] }
  0xa1   : > { %664 = vmatpush.msra.mxu0 %v647_v10  ;;  %v750_v54 = vld [vmem:[%s2210_s18 + $0x148] sm:$0xff]  ;;  %v712_v55 = vld [vmem:[%s2210_s18 + $0x18] sm:$0xff]  ;;  %v725_v57 = vld [vmem:[%s2210_s18 + $0x80] sm:$0xff] }
  0xa2   : > { %771 = vmatpush.msra.mxu2 %v736_v29  ;;  %793 = vmatpush.msra.mxu3 %v740_v36  ;;  %v747_v58 = vld [vmem:[%s2210_s18 + $0x130] sm:$0xff]  ;;  %v709_v59 = vld [vmem:[%s2210_s18] sm:$0xff]  ;;  %v2313_v60 = vld [vmem:[%s2212_s17 + $0xd8] sm:$0xff] }
  0xa3   : > { %665 = vmatpush.msra.mxu0 %v646_v11  ;;  %v722_v61 = vld [vmem:[%s2210_s18 + $0x68] sm:$0xff]  ;;  %v639_v62 = vld [vmem:[#allocation6 + $0x8] sm:$0xff]  ;;  %v880_v63 = vld [vmem:[%s2212_s17 + $0x170] sm:$0xff] }
  0xa4   : > { %772 = vmatpush.msra.mxu2 %v733_v32  ;;  %794 = vmatpush.msra.mxu3 %v737_v39  ;;  %v744_v0 = vld [vmem:[%s2210_s18 + $0x118] sm:$0xff]  ;;  %v858_v1 = vld [vmem:[%s2212_s17 + $0xc0] sm:$0xff]  ;;  %v719_v3 = vld [vmem:[%s2210_s18 + $0x50] sm:$0xff] }
  0xa5   : > { %666 = vmatpush.msra.mxu0 %v645_v12  ;;  %v877_v2 = vld [vmem:[%s2212_s17 + $0x158] sm:$0xff]  ;;  %v741_v4 = vld [vmem:[%s2210_s18 + $0x100] sm:$0xff]  ;;  %v855_v5 = vld [vmem:[%s2212_s17 + $0xa8] sm:$0xff] }
  0xa6   : > { %773 = vmatpush.msra.mxu2 %v730_v34  ;;  %795 = vmatpush.msra.mxu3 %v734_v42  ;;  %v874_v6 = vld [vmem:[%s2212_s17 + $0x140] sm:$0xff]  ;;  %v716_v7 = vld [vmem:[%s2210_s18 + $0x38] sm:$0xff]  ;;  %v738_v8 = vld [vmem:[%s2210_s18 + $0xe8] sm:$0xff] }
  0xa7   : > { %667 = vmatpush.msra.mxu0 %v644_v13  ;;  %v852_v9 = vld [vmem:[%s2212_s17 + $0x90] sm:$0xff]  ;;  %v871_v10 = vld [vmem:[%s2212_s17 + $0x128] sm:$0xff]  ;;  %v713_v11 = vld [vmem:[%s2210_s18 + $0x20] sm:$0xff] }
  0xa8   : > { %774 = vmatpush.msra.mxu2 %v727_v37  ;;  %796 = vmatpush.msra.mxu3 %v731_v47  ;;  %v735_v12 = vld [vmem:[%s2210_s18 + $0xd0] sm:$0xff]  ;;  %v849_v13 = vld [vmem:[%s2212_s17 + $0x78] sm:$0xff]  ;;  %v729_v20 = vld [vmem:[%s2210_s18 + $0xa0] sm:$0xff] }
  0xa9   : > { %668 = vmatpush.msra.mxu0 %v643_v14  ;;  %v868_v14 = vld [vmem:[%s2212_s17 + $0x110] sm:$0xff]  ;;  %v862_v21 = vld [vmem:[%s2212_s17 + $0xe0] sm:$0xff]  ;;  %v726_v22 = vld [vmem:[%s2210_s18 + $0x88] sm:$0xff] }
  0xaa   : > { %775 = vmatpush.msra.mxu2 %v724_v40  ;;  %797 = vmatpush.msra.mxu3 %v728_v53  ;;  %v723_v23 = vld [vmem:[%s2210_s18 + $0x70] sm:$0xff]  ;;  %v720_v24 = vld [vmem:[%s2210_s18 + $0x58] sm:$0xff]  ;;  %v717_v25 = vld [vmem:[%s2210_s18 + $0x40] sm:$0xff] }
  0xab   : > { %669 = vmatpush.msra.mxu0 %v642_v15  ;;  %v710_v15 = vld [vmem:[%s2210_s18 + $0x8] sm:$0xff]  ;;  %v711_v27 = vld [vmem:[%s2210_s18 + $0x10] sm:$0xff]  ;;  %v846_v28 = vld [vmem:[%s2212_s17 + $0x60] sm:$0xff] }
  0xac   : > { %776 = vmatpush.msra.mxu2 %v721_v44  ;;  %798 = vmatpush.msra.mxu3 %v725_v57  ;;  %v714_v26 = vld [vmem:[%s2210_s18 + $0x28] sm:$0xff]  ;;  %v881_v30 = vld [vmem:[%s2212_s17 + $0x178] sm:$0xff]  ;;  %v856_v32 = vld [vmem:[%s2212_s17 + $0xb0] sm:$0xff] }
  0xad   : > { %670 = vmatpush.msra.mxu0 %v641_v16  ;;  %v732_v16 = vld [vmem:[%s2210_s18 + $0xb8] sm:$0xff]  ;;  %v859_v29 = vld [vmem:[%s2212_s17 + $0xc8] sm:$0xff]  ;;  %v878_v33 = vld [vmem:[%s2212_s17 + $0x160] sm:$0xff] }
  0xae   : > { %777 = vmatpush.msra.mxu2 %v718_v49  ;;  %799 = vmatpush.msra.mxu3 %v722_v61  ;;  %v840_v34 = vld [vmem:[%s2212_s17 + $0x30] sm:$0xff]  ;;  %v875_v36 = vld [vmem:[%s2212_s17 + $0x148] sm:$0xff]  ;;  %v837_v37 = vld [vmem:[%s2212_s17 + $0x18] sm:$0xff] }
  0xaf   : > { %671 = vmatpush.msra.mxu0 %v640_v17  ;;  %v865_v17 = vld [vmem:[%s2212_s17 + $0xf8] sm:$0xff]  ;;  %v872_v39 = vld [vmem:[%s2212_s17 + $0x130] sm:$0xff]  ;;  %v834_v40 = vld [vmem:[%s2212_s17] sm:$0xff] }
  0xb0   : > { %672 = vmatmul.f32.vlgmr.msra.gmra.mxu0 %v2250_v18  ;;  %778 = vmatpush.msra.mxu2 %v715_v51  ;;  %v869_v42 = vld [vmem:[%s2212_s17 + $0x118] sm:$0xff]  ;;  %v866_v44 = vld [vmem:[%s2212_s17 + $0x100] sm:$0xff]  ;;  %v835_v49 = vld [vmem:[%s2212_s17 + $0x8] sm:$0xff] }
  0xb1   : > { %882 = vmatpush.msrb.mxu0 %v2271_v35  ;;  %800 = vmatpush.msra.mxu3 %v719_v3  ;;  %v838_v47 = vld [vmem:[%s2212_s17 + $0x20] sm:$0xff]  ;;  %v848_v53 = vld [vmem:[%s2212_s17 + $0x70] sm:$0xff] }
  0xb2   : > { %779 = vmatpush.msra.mxu2 %v712_v55  ;;  %v854_v51 = vld [vmem:[%s2212_s17 + $0xa0] sm:$0xff]  ;;  %v836_v57 = vld [vmem:[%s2212_s17 + $0x10] sm:$0xff] }
  0xb3   : > { %883 = vmatpush.msrb.mxu0 %v2277_v38  ;;  %801 = vmatpush.msra.mxu3 %v716_v7  ;;  %v842_v55 = vld [vmem:[%s2212_s17 + $0x40] sm:$0xff] }
  0xb4   : > { %780 = vmatpush.msra.mxu2 %v709_v59  ;;  %v2389_v61 = vld [vmem:[%s2214_s11] sm:$0x7] }
  0xb5   : > { %884 = vmatpush.msrb.mxu0 %v2283_v41  ;;  %802 = vmatpush.msra.mxu3 %v713_v11 }
  0xb6   : > { %905 = vmatpush.msrb.mxu2 %v880_v63 }
  0xb7   : > { %885 = vmatpush.msrb.mxu0 %v2289_v46  ;;  %803 = vmatpush.msra.mxu3 %v710_v15 }
  0xb8   : > { %675 = vmatmul.f32.gmra.mxu0 %v2253_v19  ;;  %906 = vmatpush.msrb.mxu2 %v877_v2 }
  0xb9   : > { %886 = vmatpush.msrb.mxu0 %v2299_v52  ;;  %928 = vmatpush.msrb.mxu3 %v881_v30 }
  0xba   : > { %907 = vmatpush.msrb.mxu2 %v874_v6 }
  0xbb   : > { %887 = vmatpush.msrb.mxu0 %v2306_v56  ;;  %929 = vmatpush.msrb.mxu3 %v878_v33 }
  0xbc   : > { %908 = vmatpush.msrb.mxu2 %v871_v10 }
  0xbd   : > { %888 = vmatpush.msrb.mxu0 %v2313_v60  ;;  %930 = vmatpush.msrb.mxu3 %v875_v36 }
  0xbe   : > { %909 = vmatpush.msrb.mxu2 %v868_v14 }
  0xbf   : > { %889 = vmatpush.msrb.mxu0 %v858_v1  ;;  %931 = vmatpush.msrb.mxu3 %v872_v39 }
  0xc0   : > { %910 = vmatpush.msrb.mxu2 %v865_v17 }
  0xc1   : > { %890 = vmatpush.msrb.mxu0 %v855_v5  ;;  %932 = vmatpush.msrb.mxu3 %v869_v42  ;;  %v761_v42 = vperm.slane %v2389_v61, 2 }
  0xc2   : > { %911 = vmatpush.msrb.mxu2 %v862_v21 }
  0xc3   : > { %891 = vmatpush.msrb.mxu0 %v852_v9  ;;  %933 = vmatpush.msrb.mxu3 %v866_v44 }
  0xc4   : > { %912 = vmatpush.msrb.mxu2 %v859_v29 }
  0xc5   : > { %892 = vmatpush.msrb.mxu0 %v849_v13 }
  0xc6   : > { %913 = vmatpush.msrb.mxu2 %v856_v32 }
  0xc7   : > { %893 = vmatpush.msrb.mxu0 %v846_v28 }
 0x12d   : > { %v673_v31 = vpop.f32.mrf.mxu0 }
 0x135   : > { %v676_v43 = vpop.f32.mrf.mxu0 }
 0x136   : > { %700 = vmatpush.msra.mxu1 %v676_v43  ;;  %v844_v43 = vld [vmem:[%s2212_s17 + $0x50] sm:$0xff] }
 0x138   : > { %701 = vmatpush.msra.mxu1 %v673_v31  ;;  %v843_v31 = vld [vmem:[%s2212_s17 + $0x48] sm:$0xff] }
 0x139   : > { %1389 = vmatmul.msk.f32.vlgmr.msra.gmra.mxu1 %vm679_vm0, %v638_v45  ;;  %894 = vmatpush.msrb.mxu0 %v843_v31  ;;  %v841_v45 = vld [vmem:[%s2212_s17 + $0x38] sm:$0xff] }
 0x13a   : > { %811 = vmatpush.msrb.mxu1 %v756_v48  ;;  %v860_v48 = vld [vmem:[%s2212_s17 + $0xd0] sm:$0xff] }
 0x13b   : > { %895 = vmatpush.msrb.mxu0 %v840_v34 }
 0x13c   : > { %812 = vmatpush.msrb.mxu1 %v753_v50  ;;  %v857_v50 = vld [vmem:[%s2212_s17 + $0xb8] sm:$0xff] }
 0x13d   : > { %896 = vmatpush.msrb.mxu0 %v837_v37 }
 0x13e   : > { %813 = vmatpush.msrb.mxu1 %v750_v54  ;;  %v845_v54 = vld [vmem:[%s2212_s17 + $0x58] sm:$0xff] }
 0x13f   : > { %897 = vmatpush.msrb.mxu0 %v834_v40 }
 0x140   : > { %814 = vmatpush.msrb.mxu1 %v747_v58  ;;  %898 = vmatmul.f32.vlgmr.msrb.gmra.mxu0 %v2250_v18 }
 0x141   : > { %1390 = vmatmul.msk.f32.gmra.mxu1 %vm679_vm0, %v639_v62  ;;  %v759_v62 = vperm.slane %v2389_v61, 0 }
 0x142   : > { %815 = vmatpush.msrb.mxu1 %v744_v0 }
 0x144   : > { %816 = vmatpush.msrb.mxu1 %v741_v4 }
 0x146   : > { %817 = vmatpush.msrb.mxu1 %v738_v8  ;;  %v760_v8 = vperm.slane %v2389_v61, 1 }
 0x148   : > { %818 = vmatpush.msrb.mxu1 %v735_v12 }
 0x14a   : > { %819 = vmatpush.msrb.mxu1 %v732_v16 }
 0x14c   : > { %820 = vmatpush.msrb.mxu1 %v729_v20 }
 0x14e   : > { %821 = vmatpush.msrb.mxu1 %v726_v22 }
 0x150   : > { %822 = vmatpush.msrb.mxu1 %v723_v23 }
 0x152   : > { %823 = vmatpush.msrb.mxu1 %v720_v24 }
 0x154   : > { %824 = vmatpush.msrb.mxu1 %v717_v25 }
 0x156   : > { %825 = vmatpush.msrb.mxu1 %v714_v26 }
 0x158   : > { %826 = vmatpush.msrb.mxu1 %v711_v27 }
 0x15a   : > { %1403 = vmatpush.msra.mxu1 %v2271_v35  ;;  %v853_v35 = vld [vmem:[%s2212_s17 + $0x98] sm:$0xff] }
 0x15b   : > { %914 = vmatpush.msrb.mxu2 %v853_v35 }
 0x15c   : > { %1404 = vmatpush.msra.mxu1 %v2277_v38  ;;  %v850_v38 = vld [vmem:[%s2212_s17 + $0x80] sm:$0xff] }
 0x15d   : > { %915 = vmatpush.msrb.mxu2 %v850_v38 }
 0x15e   : > { %1405 = vmatpush.msra.mxu1 %v2283_v41  ;;  %v847_v41 = vld [vmem:[%s2212_s17 + $0x68] sm:$0xff] }
 0x15f   : > { %916 = vmatpush.msrb.mxu2 %v847_v41 }
 0x160   : > { %1406 = vmatpush.msra.mxu1 %v2289_v46  ;;  %v863_v46 = vld [vmem:[%s2212_s17 + $0xe8] sm:$0xff] }
 0x161   : > { %917 = vmatpush.msrb.mxu2 %v844_v43  ;;  %934 = vmatpush.msrb.mxu3 %v863_v46 }
 0x162   : > { %1407 = vmatpush.msra.mxu1 %v2299_v52  ;;  %v851_v52 = vld [vmem:[%s2212_s17 + $0x88] sm:$0xff] }
 0x163   : > { %918 = vmatpush.msrb.mxu2 %v841_v45  ;;  %935 = vmatpush.msrb.mxu3 %v860_v48 }
 0x164   : > { %1408 = vmatpush.msra.mxu1 %v2306_v56  ;;  %v839_v56 = vld [vmem:[%s2212_s17 + $0x28] sm:$0xff] }
 0x165   : > { %919 = vmatpush.msrb.mxu2 %v838_v47  ;;  %936 = vmatpush.msrb.mxu3 %v857_v50 }
 0x166   : > { %1409 = vmatpush.msra.mxu1 %v2313_v60 }
 0x167   : > { %920 = vmatpush.msrb.mxu2 %v835_v49  ;;  %937 = vmatpush.msrb.mxu3 %v854_v51 }
 0x168   : > { %1410 = vmatpush.msra.mxu1 %v858_v1 }
 0x169   : > { %938 = vmatpush.msrb.mxu3 %v851_v52 }
 0x16a   : > { %1411 = vmatpush.msra.mxu1 %v855_v5 }
 0x16b   : > { %939 = vmatpush.msrb.mxu3 %v848_v53 }
 0x16c   : > { %1412 = vmatpush.msra.mxu1 %v852_v9 }
 0x16d   : > { %940 = vmatpush.msrb.mxu3 %v845_v54 }
 0x16e   : > { %1413 = vmatpush.msra.mxu1 %v849_v13 }
 0x16f   : > { %941 = vmatpush.msrb.mxu3 %v842_v55 }
 0x170   : > { %1414 = vmatpush.msra.mxu1 %v846_v28 }
 0x171   : > { %942 = vmatpush.msrb.mxu3 %v839_v56 }
 0x172   : > { %1415 = vmatpush.msra.mxu1 %v843_v31  ;;  %v1543_v31 = vld [vmem:[%s627_s6] ss:$0 sm:$0xff] }
 0x173   : > { %943 = vmatpush.msrb.mxu3 %v836_v57 }
 0x174   : > { %1416 = vmatpush.msra.mxu1 %v840_v34 }
 0x176   : > { %1417 = vmatpush.msra.mxu1 %v837_v37 }
 0x178   : > { %1418 = vmatpush.msra.mxu1 %v834_v40 }
 0x1b6   : > { %v703_v58 = vpop.f32.mrf.mxu1 }
 0x1b7   : > { %781 = vmatmul.f32.vlgmr.msra.gmra.mxu2 %v703_v58  ;;  %804 = vmatmul.f32.vlgmr.msra.gmra.mxu3 %v703_v58 }
 0x1b8   : > { %827 = vmatmul.f32.vlgmr.msrb.gmra.mxu1 %v703_v58 }
 0x1bd   : > { %v899_v0 = vpop.f32.mrf.mxu0 }
 0x1be   : > { %v706_v59 = vpop.f32.mrf.mxu1 }
 0x1bf   : > { %784 = vmatmul.f32.gmra.mxu2 %v706_v59  ;;  %807 = vmatmul.f32.gmra.mxu3 %v706_v59 }
 0x1c0   : > { %830 = vmatmul.f32.gmra.mxu1 %v706_v59 }
 0x1c7   : > { %921 = vmatmul.f32.vlgmr.msrb.gmra.mxu2 %v2250_v18  ;;  %944 = vmatmul.f32.vlgmr.msrb.gmra.mxu3 %v2250_v18 }
 0x1c8   : > { %901 = vmatmul.f32.vlgmr.msra.gmra.mxu1 %v2253_v19 }
 0x1cf   : > { %924 = vmatmul.f32.gmra.mxu2 %v2253_v19  ;;  %947 = vmatmul.f32.gmra.mxu3 %v2253_v19 }
 0x235   : > { %v828_v60 = vpop.f32.mrf.mxu1 }
 0x236   : > { %v829_v49 = vadd.f32 %v828_v60, %v761_v42 }
 0x23a   : > { %v782_v63 = vpop.f32.mrf.mxu2  ;;  %v805_v5 = vpop.f32.mrf.mxu3 }
 0x23b   : > { %v783_v1 = vadd.f32 %v782_v63, %v759_v62  ;;  %v806_v14 = vadd.f32 %v805_v5, %v760_v8 }
 0x23d   : > { %v2392_v2 = vpop.f32.mrf.mxu1  ;;  %v951_v3 = vadd.f32 %v899_v0, %v783_v1 }
 0x23f   : > { %v1391_v4 = vmul.f32 -1.442695, %v951_v3 }
 0x241   : > { %1544 = vpow2.f32 %v1391_v4 }
 0x242   : > { %v785_v6 = vpop.f32.mrf.mxu2  ;;  %v808_v17 = vpop.f32.mrf.mxu3 }
 0x243   : > { %v786_v7 = vadd.f32 %v785_v6, %v759_v62  ;;  %v809_v23 = vadd.f32 %v808_v17, %v760_v8  ;;  %v832_v6 = vadd.f32 %v2392_v2, %v761_v42 }
 0x245   : > { %v902_v9 = vpop.f32.mrf.mxu1 }
 0x246   : > { %v952_v10 = vadd.f32 %v902_v9, %v786_v7 }
 0x247   : > { %v1545_v11 = vpop.eup %1544 }
 0x248   : > { %v959_v12 = vadd.f32 1.0, %v1545_v11  ;;  %v1392_v13 = vmul.f32 -1.442695, %v952_v10 }
 0x24a   : > { %1546 = vrcp.f32 %v959_v12  ;;  %v922_v15 = vpop.f32.mrf.mxu2  ;;  %v945_v29 = vpop.f32.mrf.mxu3  ;;  %v972_v30 = vand.u32 2147483648, %v959_v12  ;;  %v970_v35 = vand.u32 2147483647, %v959_v12  ;;  %vm966_vm2 = vweird.f32 %v959_v12 }
 0x24b   : > { %1548 = vpow2.f32 %v1392_v13  ;;  %v991_v16 = vadd.f32 %v922_v15, %v806_v14  ;;  %v1035_v39 = vadd.f32 %v1543_v31, %v945_v29 }
 0x24c   : > { %v973_v38 = vor.u32 1.1754944e-38, %v972_v30  ;;  %vm971_vm4 = vcmp.eq.f32.partialorder %v970_v35, 8.507059e+37 }
 0x24d   : > { %v1393_v20 = vmul.f32 -1.442695, %v991_v16 }
 0x24f   : > { %1550 = vpow2.f32 %v1393_v20 }
 0x250   : > { %v1547_v21 = vpop.eup %1546 }
 0x251   : > { %v1549_v22 = vpop.eup %1548  ;;  %v962_v24 = vmul.f32 %v1547_v21, %v959_v12  ;;  %vm967_vm1 = vweird.f32 %v1547_v21 }
 0x252   : > { %v960_v25 = vadd.f32 1.0, %v1549_v22  ;;  %v925_v26 = vpop.f32.mrf.mxu2  ;;  %vm968_vm3 = vmor %vm966_vm2, %vm967_vm1  ;;  %v948_v51 = vpop.f32.mrf.mxu3 }
 0x253   : > { %v992_v27 = vadd.f32 %v925_v26, %v809_v23  ;;  %v963_v28 = vsub.f32 1.0, %v962_v24  ;;  %v1036_v59 = vadd.f32 %v1543_v31, %v948_v51 }
 0x254   : > { %1552 = vrcp.f32 %v960_v25  ;;  %v985_v52 = vand.u32 2147483647, %v960_v25  ;;  %v987_v53 = vand.u32 2147483648, %v960_v25  ;;  %vm981_vm6 = vweird.f32 %v960_v25 }
 0x255   : > { %v1551_v32 = vpop.eup %1550  ;;  %v1394_v33 = vmul.f32 -1.442695, %v992_v27  ;;  %v964_v34 = vmul.f32 %v1547_v21, %v963_v28 }
 0x256   : > { %v999_v36 = vadd.f32 1.0, %v1551_v32  ;;  %vm986_vm8 = vcmp.eq.f32.partialorder %v985_v52, 8.507059e+37  ;;  %v988_v62 = vor.u32 1.1754944e-38, %v987_v53 }
 0x257   : > { %1554 = vpow2.f32 %v1394_v33  ;;  %v965_v37 = vadd.f32 %v1547_v21, %v964_v34 }
 0x258   : > { %1556 = vrcp.f32 %v999_v36  ;;  %v1012_v61 = vand.u32 2147483648, %v999_v36  ;;  %v1010_v60 = vand.u32 2147483647, %v999_v36  ;;  %vm1006_vm10 = vweird.f32 %v999_v36 }
 0x259   : > { %v969_v40 = vsel %vm968_vm3, %v1547_v21, %v965_v37 }
 0x25a   : > { %v1553_v41 = vpop.eup %1552  ;;  %v974_v43 = vsel %vm971_vm4, %v973_v38, %v969_v40  ;;  %v1013_v7 = vor.u32 1.1754944e-38, %v1012_v61  ;;  %vm1011_vm12 = vcmp.eq.f32.partialorder %v1010_v60, 8.507059e+37 }
 0x25b   : > { %v977_v44 = vmul.f32 %v1553_v41, %v960_v25  ;;  %v1037_v45 = vmul.f32 %v1035_v39, %v974_v43  ;;  %vm982_vm5 = vweird.f32 %v1553_v41 }
 0x25c   : > { %vm983_vm7 = vmor %vm981_vm6, %vm982_vm5 }
 0x25d   : > { %v1555_v46 = vpop.eup %1554  ;;  %v978_v47 = vsub.f32 1.0, %v977_v44  ;;  %v1039_v56 = vadd.f32 %v1037_v45, %v829_v49 }
 0x25e   : > { %v1557_v48 = vpop.eup %1556  ;;  %v1000_v50 = vadd.f32 1.0, %v1555_v46 }
 0x25f   : > { %v1002_v54 = vmul.f32 %v1557_v48, %v999_v36  ;;  %v979_v55 = vmul.f32 %v1553_v41, %v978_v47  ;;  %vm1007_vm9 = vweird.f32 %v1557_v48 }
 0x260   : > { %1558 = vrcp.f32 %v1000_v50  ;;  %vm1008_vm11 = vmor %vm1006_vm10, %vm1007_vm9  ;;  %v1025_v15 = vand.u32 2147483647, %v1000_v50  ;;  %v1027_v16 = vand.u32 2147483648, %v1000_v50  ;;  %vm1021_vm14 = vweird.f32 %v1000_v50 }
 0x261   : > { %v1003_v57 = vsub.f32 1.0, %v1002_v54  ;;  %v980_v58 = vadd.f32 %v1553_v41, %v979_v55  ;;  %1560 = vtanh.f32 %v1039_v56 }
 0x262   : > { %v1028_v23 = vor.u32 1.1754944e-38, %v1027_v16  ;;  %vm1026_vm1 = vcmp.eq.f32.partialorder %v1025_v15, 8.507059e+37 }
 0x263   : > { %v1004_v63 = vmul.f32 %v1557_v48, %v1003_v57  ;;  %v984_v0 = vsel %vm983_vm7, %v1553_v41, %v980_v58 }
 0x264   : > { %v989_v1 = vsel %vm986_vm8, %v988_v62, %v984_v0 }
 0x265   : > { %v1005_v3 = vadd.f32 %v1557_v48, %v1004_v63  ;;  %v1038_v4 = vmul.f32 %v1036_v59, %v989_v1 }
 0x266   : > { %v1559_v5 = vpop.eup %1558 }
 0x267   : > { %v1017_v8 = vmul.f32 %v1559_v5, %v1000_v50  ;;  %v1009_v9 = vsel %vm1008_vm11, %v1557_v48, %v1005_v3  ;;  %v1040_v11 = vadd.f32 %v1038_v4, %v832_v6  ;;  %v1561_v14 = vpop.eup %1560  ;;  %vm1022_vm13 = vweird.f32 %v1559_v5 }
 0x268   : > { %v1014_v10 = vsel %vm1011_vm12, %v1013_v7, %v1009_v9  ;;  %vm1023_vm15 = vmor %vm1021_vm14, %vm1022_vm13 }
 0x269   : > { %v1018_v12 = vsub.f32 1.0, %v1017_v8  ;;  %v1043_v13 = vsub.f32 1.0, %v1014_v10  ;;  %v1047_v21 = vmul.f32 %v1014_v10, %v2250_v18  ;;  %1562 = vtanh.f32 %v1040_v11 }
 0x26b   : > { %v1019_v17 = vmul.f32 %v1559_v5, %v1018_v12  ;;  %v1045_v20 = vmul.f32 %v1561_v14, %v1043_v13 }
 0x26d   : > { %v1020_v22 = vadd.f32 %v1559_v5, %v1019_v17  ;;  %v1049_v2 = vadd.f32 %v1047_v21, %v1045_v20 }
 0x26f   : > { %v1051_v24 = vmax.f32 %v1049_v2, 0.0  ;;  %v1024_v25 = vsel %vm1023_vm15, %v1559_v5, %v1020_v22  ;;  %v1563_v28 = vpop.eup %1562 }
 0x270   : > { %v1029_v26 = vsel %vm1026_vm1, %v1028_v23, %v1024_v25 }
 0x271   : > { %1053 = vst [vmem:[#allocation2] sm:$0xff] %v1051_v24  ;;  %v1044_v27 = vsub.f32 1.0, %v1029_v26  ;;  %v1048_v30 = vmul.f32 %v1029_v26, %v2253_v19 }
 0x273   : > { %v1046_v29 = vmul.f32 %v1563_v28, %v1044_v27 }
 0x275   : > { %v1050_v31 = vadd.f32 %v1048_v30, %v1046_v29  ;;  %1058 = sbr.rel (%p1395_p1) target bundleno = 1089 (0x441), region = 112 }
 0x277   : > { %v1052_v32 = vmax.f32 %v1050_v31, 0.0 }
 0x279   : > { %1054 = vst [vmem:[#allocation2 + $0x8] sm:$0xff] %v1052_v32 }
 0x27a   : > { %1077 = vmatpush.msra.mxu0 %v1052_v32  ;;  %v1059_v18 = vld [vmem:[#allocation12] sm:$0xff]  ;;  %v1097_v34 = vld [vmem:[#allocation13 + $0x70] sm:$0xff]  ;;  %v1096_v35 = vld [vmem:[#allocation13 + $0x68] sm:$0xff]  ;;  %v1169_v10 = vlaneseq }
 0x27b   : > { %v1098_v33 = vld [vmem:[#allocation13 + $0x78] sm:$0xff]  ;;  %v1095_v36 = vld [vmem:[#allocation13 + $0x60] sm:$0xff]  ;;  %v1093_v19 = vld [vmem:[#allocation13 + $0x50] sm:$0xff] }
 0x27c   : > { %1103 = vmatpush.msra.mxu1 %v1098_v33  ;;  %1078 = vmatpush.msra.mxu0 %v1051_v24  ;;  %v1094_v37 = vld [vmem:[#allocation13 + $0x58] sm:$0xff]  ;;  %v1092_v38 = vld [vmem:[#allocation13 + $0x48] sm:$0xff]  ;;  %v1091_v39 = vld [vmem:[#allocation13 + $0x40] sm:$0xff]  ;;  %v1170_v11 = vshrl.u32 %v1169_v10, 7 }
 0x27d   : > { %1396 = vmatmul.msk.f32.vlgmr.msra.gmra.mxu0 %vm679_vm0, %v1059_v18  ;;  %v1090_v40 = vld [vmem:[#allocation13 + $0x38] sm:$0xff]  ;;  %v1089_v41 = vld [vmem:[#allocation13 + $0x30] sm:$0xff]  ;;  %v1088_v42 = vld [vmem:[#allocation13 + $0x28] sm:$0xff] }
 0x27e   : > { %1104 = vmatpush.msra.mxu1 %v1097_v34  ;;  %v1087_v43 = vld [vmem:[#allocation13 + $0x20] sm:$0xff]  ;;  %v1086_v44 = vld [vmem:[#allocation13 + $0x18] sm:$0xff]  ;;  %v1085_v45 = vld [vmem:[#allocation13 + $0x10] sm:$0xff]  ;;  %vm1171_vm2 = vcmp.lt.s32.totalorder %v1170_v11, 2 }
 0x27f   : > { %v1084_v46 = vld [vmem:[#allocation13 + $0x8] sm:$0xff]  ;;  %v1083_v47 = vld [vmem:[#allocation13] sm:$0xff]  ;;  %v1144_v48 = vld [vmem:[#allocation15 + $0x78] sm:$0xff] }
 0x280   : > { %1105 = vmatpush.msra.mxu1 %v1096_v35  ;;  %v1143_v49 = vld [vmem:[#allocation15 + $0x70] sm:$0xff]  ;;  %1149 = vmatpush.msra.mxu2 %v1144_v48  ;;  %v1142_v50 = vld [vmem:[#allocation15 + $0x68] sm:$0xff]  ;;  %v1141_v51 = vld [vmem:[#allocation15 + $0x60] sm:$0xff] }
 0x281   : > { %v1140_v52 = vld [vmem:[#allocation15 + $0x58] sm:$0xff]  ;;  %v1139_v53 = vld [vmem:[#allocation15 + $0x50] sm:$0xff]  ;;  %v1138_v54 = vld [vmem:[#allocation15 + $0x48] sm:$0xff] }
 0x282   : > { %1106 = vmatpush.msra.mxu1 %v1095_v36  ;;  %1150 = vmatpush.msra.mxu2 %v1143_v49  ;;  %v1137_v56 = vld [vmem:[#allocation15 + $0x40] sm:$0xff]  ;;  %v1136_v57 = vld [vmem:[#allocation15 + $0x38] sm:$0xff]  ;;  %v1135_v58 = vld [vmem:[#allocation15 + $0x30] sm:$0xff] }
 0x283   : > { %v1134_v59 = vld [vmem:[#allocation15 + $0x28] sm:$0xff]  ;;  %v1133_v61 = vld [vmem:[#allocation15 + $0x20] sm:$0xff]  ;;  %v1132_v62 = vld [vmem:[#allocation15 + $0x18] sm:$0xff] }
 0x284   : > { %1107 = vmatpush.msra.mxu1 %v1094_v37  ;;  %1151 = vmatpush.msra.mxu2 %v1142_v50  ;;  %v1131_v63 = vld [vmem:[#allocation15 + $0x10] sm:$0xff]  ;;  %v1130_v60 = vld [vmem:[#allocation15 + $0x8] sm:$0xff]  ;;  %v1129_v0 = vld [vmem:[#allocation15] sm:$0xff] }
 0x285   : > { %v1564_v1 = vld [vmem:[%s2478_s15] ss:$0 sm:$0xff] }
 0x286   : > { %1108 = vmatpush.msra.mxu1 %v1093_v19  ;;  %1152 = vmatpush.msra.mxu2 %v1141_v51  ;;  %v1565_v12 = vld [vmem:[%s2479_s28] ss:$0 sm:$0xff] }
 0x288   : > { %1109 = vmatpush.msra.mxu1 %v1092_v38  ;;  %1153 = vmatpush.msra.mxu2 %v1140_v52 }
 0x28a   : > { %1110 = vmatpush.msra.mxu1 %v1091_v39  ;;  %1154 = vmatpush.msra.mxu2 %v1139_v53 }
 0x28c   : > { %1111 = vmatpush.msra.mxu1 %v1090_v40  ;;  %1155 = vmatpush.msra.mxu2 %v1138_v54 }
 0x28e   : > { %1112 = vmatpush.msra.mxu1 %v1089_v41  ;;  %1156 = vmatpush.msra.mxu2 %v1137_v56 }
 0x290   : > { %1113 = vmatpush.msra.mxu1 %v1088_v42  ;;  %1157 = vmatpush.msra.mxu2 %v1136_v57 }
 0x292   : > { %1114 = vmatpush.msra.mxu1 %v1087_v43  ;;  %1158 = vmatpush.msra.mxu2 %v1135_v58 }
 0x294   : > { %1115 = vmatpush.msra.mxu1 %v1086_v44  ;;  %1159 = vmatpush.msra.mxu2 %v1134_v59 }
 0x296   : > { %1116 = vmatpush.msra.mxu1 %v1085_v45  ;;  %1160 = vmatpush.msra.mxu2 %v1133_v61 }
 0x298   : > { %1117 = vmatpush.msra.mxu1 %v1084_v46  ;;  %1161 = vmatpush.msra.mxu2 %v1132_v62 }
 0x29a   : > { %1118 = vmatpush.msra.mxu1 %v1083_v47  ;;  %1162 = vmatpush.msra.mxu2 %v1131_v63 }
 0x29c   : > { %1163 = vmatpush.msra.mxu2 %v1130_v60 }
 0x29e   : > { %1164 = vmatpush.msra.mxu2 %v1129_v0 }
 0x2fa   : > { %v1080_v55 = vpop.f32.mrf.mxu0 }
 0x2fb   : > { %1119 = vmatmul.f32.vlgmr.msra.gmra.mxu1 %v1080_v55 }
 0x378   : > { %v1120_v3 = vpop.f32.mrf.mxu1 }
 0x379   : > { %v1121_v4 = vadd.f32 %v1564_v1, %v1120_v3 }
 0x37b   : > { %v1124_v5 = vmin.f32 %v1121_v4, 0.0  ;;  %vm1123_vm0 = vcmp.gt.f32.partialorder %v1121_v4, 0.0 }
 0x37d   : > { %v1125_v6 = vmul.f32 1.442695, %v1124_v5 }
 0x37f   : > { %1566 = vpow2.f32 %v1125_v6 }
 0x385   : > { %v1567_v7 = vpop.eup %1566 }
 0x386   : > { %v1397_v8 = vadd.f32 -1.0, %v1567_v7 }
 0x388   : > { %v1128_v9 = vsel %vm1123_vm0, %v1121_v4, %v1397_v8 }
 0x389   : > { %1165 = vmatmul.f32.vlgmr.msra.gmra.mxu2 %v1128_v9 }
 0x40c   : > { %v1166_v13 = vpop.f32.mrf.mxu2 }
 0x40d   : > { %v1167_v14 = vadd.f32 %v1565_v12, %v1166_v13 }
 0x40f   : > { %v1172_v15 = vsel %vm1171_vm2, %v1167_v14, -1e+30 }
 0x410   : > { %v1173_v16 = vrot.slane %v1172_v15, 4 }
 0x412   : > { %v1174_v17 = vmax.f32 %v1172_v15, %v1173_v16 }
 0x414   : > { %v1175_v20 = vrot.slane %v1174_v17, 2 }
 0x416   : > { %v1176_v21 = vmax.f32 %v1174_v17, %v1175_v20 }
 0x418   : > { %v1177_v22 = vrot.slane %v1176_v21, 1 }
 0x41a   : > { %v1178_v2 = vmax.f32 %v1176_v21, %v1177_v22 }
 0x41c   : > { %v1179_v23 = vsub.f32 %v1172_v15, %v1178_v2 }
 0x41e   : > { %v1180_v24 = vmul.f32 1.442695, %v1179_v23 }
 0x420   : > { %1568 = vpow2.f32 %v1180_v24 }
 0x426   : > { %v1569_v25 = vpop.eup %1568 }
 0x427   : > { %v1182_v26 = vrot.slane %v1569_v25, 4 }
 0x429   : > { %v1183_v27 = vadd.f32 %v1569_v25, %v1182_v26 }
 0x42b   : > { %v1184_v28 = vrot.slane %v1183_v27, 2 }
 0x42d   : > { %v1185_v29 = vadd.f32 %v1184_v28, %v1183_v27 }
 0x42f   : > { %v1186_v30 = vrot.slane %v1185_v29, 1 }
 0x431   : > { %v1187_v31 = vadd.f32 %v1186_v30, %v1185_v29 }
 0x433   : > { %1570 = vlog2.f32 %v1187_v31 }
 0x439   : > { %v1571_v32 = vpop.eup %1570 }
 0x43a   : > { %v1189_v18 = vmul.f32 0.6931472, %v1571_v32 }
 0x43c   : > { %v1190_v33 = vadd.f32 %v1189_v18, %v1178_v2 }
 0x43e   : > { %v1191_v34 = vsub.f32 %v1167_v14, %v1190_v33 }
 0x440   : > { %1192 = vst [vmem:[#allocation16] sm:$0xff] %v1191_v34 }
 0x441 PF: > { %p1499_p4 = scmp.eq.s32.totalorder %s2020_s25, 3  ;;  %s1935_s3 = smov [#allocation16]  }
 0x442   : > { %s1199_s16 = sshll.u32 %s1935_s3, 4  ;;  %s2480_s27 = sld [smem:[#allocation33_spill]]  ;;  %s1200_s16 = int_to_ptr.vmem [resolvable:$true] %s1199_s16 }
 0x448   : > { %s1201_s13 = sshll.u32 %s2480_s27, 4  ;;  %s1202_s13 = int_to_ptr.hbm [resolvable:$true] %s1201_s13 }
 0x449   : > { %1456 = dma.vmem_to_hbm [thread:$0]  (%p1499_p4), %s1200_s16, 128, %s1202_s13, [#allocation5]  }
 0x44a   : > { %1907 = dma.done.wait (%p1499_p4), [#allocation5], 128  }
 0x44b   : > { %1909 = vsyncadd (%p1499_p4), [#allocation5], 4294967168 }
 0x44c PF: > { %s2481_s24 = sld [smem:[#allocation24_spill]]  ;;  %s2484_s21 = smov %s1916_s22 }
 0x44d   : > { %s2482_s12 = sld [smem:[#allocation23_spill]] }
 0x44e   : > { %s2483_s23 = sld [smem:[#allocation25_spill]] }
 0x452   : > { %p23_p6 = scmp.ge.s32.totalorder %s2481_s24, 6  }
 0x453   : > { %s2485_s22 = smov %s2482_s12 }
 0x454   :  { %25 = sbr.rel (!%p23_p6) target bundleno = 14 (0xe), region = 168 }
 0x459   :  { %1215 = vsyncpa [#allocation4], 1 }
 0x45a   :  { %1217 = vsyncpa [#allocation4 + $0x1], 1 }
 0x45b   :  { %1218 = vsyncpa [#allocation7], 1 }
 0x45c   :  { %1219 = vsyncpa [#allocation14], 1 }
 0x45d   :  { %1220 = vsyncpa [#allocation5], 1 }
 0x45e   :  { %1222 = vsyncpa [#allocation5 + $0x1], 1 }

</bundles_post_ra>
